<compile_context>
chip_gen: v6e
topology: v6e:2x2x1
jax: 0.10.0
libtpu: 0.0.40
codegen_flags: <defaults>
</compile_context>

<pallas_src>
import functools

import jax
import jax.numpy as jnp
import numpy as np
from jax import lax
from jax.experimental import pallas as pl
from jax.experimental.pallas import tpu as pltpu


def _varatt_block_kernel(x_ref, gamma_ref, beta_ref,
                         wqk_ref, wv_ref, wproj_ref,
                         bproj_ref, wgate_ref, bgate_ref,
                         o_ref,
                         xn_scr, v_scr, y_scr,
                         *, N, P, H, hd, eps):
    C = H * hd
    f32 = jnp.float32
    bf16 = jnp.bfloat16

    gamma = gamma_ref[...]                               # (1, C) f32
    beta = beta_ref[...]                                 # (1, C) f32

    # ---- Phase 1: per-patch LayerNorm (f32 stats) into a patch-major bf16 slab, and
    #      the mean-over-P pool for q/k (pooling commutes with the linear projection).
    pool = jnp.zeros((N, C), f32)
    for p in range(P):
        xp = x_ref[0, :, p, :].astype(f32)               # (N, C), strided VMEM read
        mu = jnp.mean(xp, axis=-1, keepdims=True)
        xc = xp - mu
        var = jnp.mean(xc * xc, axis=-1, keepdims=True)
        xn_p = xc * lax.rsqrt(var + eps) * gamma + beta  # (N, C) f32
        pool = pool + xn_p
        xn_scr[p * N:(p + 1) * N, :] = xn_p.astype(bf16)  # patch-major rows
    pool_bf = (pool * (1.0 / P)).astype(bf16)            # (N, C)

    # ---- Phase 2: fused pooled q/k projection + per-head attention probabilities -----
    qk = jnp.dot(pool_bf, wqk_ref[...], preferred_element_type=f32)   # (N, 2C) f32
    scale = float(hd) ** -0.5
    attn_bf = []
    for h in range(H):                                   # H is small: static unroll
        qh = qk[:, h * hd:(h + 1) * hd].astype(bf16)
        kh = qk[:, C + h * hd:C + (h + 1) * hd].astype(bf16)
        s = lax.dot_general(qh, kh, (((1,), (1,)), ((), ())),
                            preferred_element_type=f32) * scale       # (N, N) f32
        s = s - jnp.max(s, axis=-1, keepdims=True)
        e = jnp.exp(s)
        a = e * pl.reciprocal(jnp.sum(e, axis=-1, keepdims=True), approx=True)
        attn_bf.append(a.astype(bf16))

    # ---- Phase 3: full-resolution value projection as ONE big matmul ------------------
    v_scr[...] = jnp.dot(xn_scr[...], wv_ref[...],
                         preferred_element_type=f32).astype(bf16)     # (P*N, C)

    # ---- Phase 4: batched value application: one lane-dense matmul per head -----------
    # RHS for head h is the (N, P*hd) concat of its P patch blocks; the result is
    # scattered into the (P*N, C) projection-input scratch at its natural offsets.
    for h in range(H):
        pieces = [v_scr[p * N:(p + 1) * N, h * hd:(h + 1) * hd] for p in range(P)]
        vcat = jnp.concatenate(pieces, axis=1)                        # (N, P*hd) bf16
        oh = jnp.dot(attn_bf[h], vcat, preferred_element_type=f32)    # (N, P*hd) f32
        oh_bf = oh.astype(bf16)
        for p in range(P):
            y_scr[p * N:(p + 1) * N, h * hd:(h + 1) * hd] = oh_bf[:, p * hd:(p + 1) * hd]

    # ---- Phase 5: single output projection (C-wide, no ragged gate column) ------------
    yp = jnp.dot(y_scr[...], wproj_ref[...],
                 preferred_element_type=f32) + bproj_ref[...]         # (P*N, C) f32

    # ---- Phase 6: gate (lane reduction) + sigmoid + residual, per-patch epilogue ------
    wg = wgate_ref[...]                                  # (1, C) f32
    bg = bgate_ref[...]                                  # (1, 1) f32
    for p in range(P):
        yp_p = yp[p * N:(p + 1) * N, :]                  # (N, C)
        g = jnp.sum(yp_p * wg, axis=-1, keepdims=True) + bg
        gated = jax.nn.sigmoid(g) * yp_p
        res = x_ref[0, :, p, :].astype(f32) + gated      # residual re-read from x_ref
        o_ref[0, :, p, :] = res.astype(o_ref.dtype)


def _pick_vmem_limit(est_bytes):
    """Generation-aware VMEM scoped limit (leaves headroom below physical capacity)."""
    cap = 128 * 1024 * 1024
    try:
        info = pltpu.get_tpu_info()
        cap = int(getattr(info, "vmem_capacity_bytes", cap) or cap)
    except Exception:
        pass
    headroom = 8 * 1024 * 1024
    hi = max(cap - headroom, 16 * 1024 * 1024)
    want = max(int(est_bytes * 1.5), 32 * 1024 * 1024)
    return int(min(want, hi))


def varatt_block(x, params, *, num_heads, eps=1e-5):
    B, N, P, C = x.shape
    H = num_heads
    assert C % H == 0, "dim should be divisible by num_heads"
    hd = C // H
    PN = P * N

    # --- weight prep (tiny, host/XLA side) -------------------------------------------
    w_qkv = params["w_qkv"]                              # (3C, C), PyTorch (out, in)
    wqk_bf = jnp.concatenate([w_qkv[:C].T, w_qkv[C:2 * C].T], axis=1).astype(jnp.bfloat16)
    wv_bf = w_qkv[2 * C:].T.astype(jnp.bfloat16)         # (C, C)
    wproj_bf = params["w_proj"].T.astype(jnp.bfloat16)   # (C, C)
    bproj = params["b_proj"].reshape(1, C).astype(jnp.float32)
    wgate = params["w_gate"].reshape(1, C).astype(jnp.float32)
    bgate = params["b_gate"].reshape(1, 1).astype(jnp.float32)
    gamma = params["ln_gamma"].reshape(1, C).astype(jnp.float32)
    beta = params["ln_beta"].reshape(1, C).astype(jnp.float32)

    kernel = functools.partial(_varatt_block_kernel, N=N, P=P, H=H, hd=hd, eps=eps)

    itm = np.dtype(x.dtype).itemsize
    est_bytes = (2 * PN * C * itm                        # x block, double-buffered
                 + 2 * PN * C * itm                      # out block, double-buffered
                 + 3 * PN * C * 2                        # bf16 scratch slabs (xn, v, y)
                 + 2 * PN * C * 4                        # f32 projection output + temps
                 + 2 * (4 * C * C) * 2 + 8 * C * 4)      # bf16 weights + small vectors
    vmem_limit = _pick_vmem_limit(est_bytes)

    out = pl.pallas_call(
        kernel,
        out_shape=jax.ShapeDtypeStruct((B, N, P, C), x.dtype),
        grid_spec=pltpu.PrefetchScalarGridSpec(
            num_scalar_prefetch=0,
            grid=(B,),
            in_specs=[
                pl.BlockSpec((1, N, P, C), lambda b: (b, 0, 0, 0)),   # x (unchanged layout)
                pl.BlockSpec((1, C), lambda b: (0, 0)),               # ln gamma
                pl.BlockSpec((1, C), lambda b: (0, 0)),               # ln beta
                pl.BlockSpec((C, 2 * C), lambda b: (0, 0)),           # [Wq^T | Wk^T] bf16
                pl.BlockSpec((C, C), lambda b: (0, 0)),               # Wv^T bf16
                pl.BlockSpec((C, C), lambda b: (0, 0)),               # Wproj^T bf16
                pl.BlockSpec((1, C), lambda b: (0, 0)),               # bproj f32
                pl.BlockSpec((1, C), lambda b: (0, 0)),               # gate weight row f32
                pl.BlockSpec((1, 1), lambda b: (0, 0)),               # gate bias f32
            ],
            out_specs=pl.BlockSpec((1, N, P, C), lambda b: (b, 0, 0, 0)),
            scratch_shapes=[
                pltpu.VMEM((PN, C), jnp.bfloat16),   # xn (patch-major)
                pltpu.VMEM((PN, C), jnp.bfloat16),   # v  (patch-major)
                pltpu.VMEM((PN, C), jnp.bfloat16),   # attention output / projection input
            ],
        ),
        compiler_params=pltpu.CompilerParams(
            dimension_semantics=("parallel",),
            vmem_limit_bytes=vmem_limit,
        ),
    )(x, gamma, beta, wqk_bf, wv_bf, wproj_bf, bproj, wgate, bgate)
    return out


def init_params(key, dim):
    ks = jax.random.split(key, 7)
    s = 0.2 / np.sqrt(dim)
    return {
        "ln_gamma": 1.0 + 0.1 * jax.random.normal(ks[0], (dim,), jnp.float32),
        "ln_beta": 0.1 * jax.random.normal(ks[1], (dim,), jnp.float32),
        "w_qkv": s * jax.random.normal(ks[2], (3 * dim, dim), jnp.float32),
        "w_proj": s * jax.random.normal(ks[3], (dim, dim), jnp.float32),
        "b_proj": 0.1 * jax.random.normal(ks[4], (dim,), jnp.float32),
        "w_gate": s * jax.random.normal(ks[5], (1, dim), jnp.float32),
        "b_gate": 0.1 * jax.random.normal(ks[6], (1,), jnp.float32),
    }


def reference(x, params, *, num_heads):
    """Pure-JAX (f32) transcription of the PyTorch forward (eval mode, no dropout)."""
    B, N, P, C = x.shape
    H = num_heads
    hd = C // H
    mu = x.mean(-1, keepdims=True)
    var = ((x - mu) ** 2).mean(-1, keepdims=True)
    xn = (x - mu) / jnp.sqrt(var + 1e-5) * params["ln_gamma"] + params["ln_beta"]
    qkv = xn @ params["w_qkv"].T                                       # (B,N,P,3C)
    qkv = qkv.reshape(B, N, P, 3, H, hd).transpose(3, 0, 2, 4, 1, 5)   # (3,B,P,H,N,hd)
    q, k, v = qkv[0], qkv[1], qkv[2]
    qm = q.mean(axis=1)                                                # (B,H,N,hd)
    km = k.mean(axis=1)                                                # (B,H,N,hd)
    vv = v.transpose(0, 2, 3, 4, 1).reshape(B, H, N, hd * P)           # (B,H,N,hd*P)
    scale = hd ** -0.5
    s = jnp.einsum("bhnd,bhmd->bhnm", qm, km) * scale
    attn = jax.nn.softmax(s, axis=-1)
    o = jnp.einsum("bhnm,bhme->bhne", attn, vv)                        # (B,H,N,hd*P)
    o = o.reshape(B, H, N, hd, P).transpose(0, 2, 4, 1, 3).reshape(B, N, P, C)
    o = o @ params["w_proj"].T + params["b_proj"]
    gate = o @ params["w_gate"].T + params["b_gate"]
    gated = jax.nn.sigmoid(gate) * o
    return x + gated


if __name__ == "__main__":
    B, N, P, C, H = 2, 8, 4, 32, 4
    key = jax.random.PRNGKey(0)
    kx, kp = jax.random.split(key)
    x = jax.random.normal(kx, (B, N, P, C), jnp.float32)
    params = init_params(kp, C)

    out = varatt_block(x, params, num_heads=H)
    out = jax.block_until_ready(out)

    ref = reference(x, params, num_heads=H)
    # kernel runs its matmuls in bf16 (f32 accumulation) -> loosened tolerance vs f32 ref
    np.testing.assert_allclose(np.asarray(out), np.asarray(ref), rtol=1e-2, atol=1e-2)
    print("KERNEL_OK")
</pallas_src>

<mosaic_0001>
module attributes {stable_mosaic.version = 11 : i64} {
  func.func @_varatt_block_kernel(%arg0: i32, %arg1: memref<1x8x4x32xf32, #tpu.memory_space<vmem>>, %arg2: memref<1x32xf32, #tpu.memory_space<vmem>>, %arg3: memref<1x32xf32, #tpu.memory_space<vmem>>, %arg4: memref<32x64xbf16, #tpu.memory_space<vmem>>, %arg5: memref<32x32xbf16, #tpu.memory_space<vmem>>, %arg6: memref<32x32xbf16, #tpu.memory_space<vmem>>, %arg7: memref<1x32xf32, #tpu.memory_space<vmem>>, %arg8: memref<1x32xf32, #tpu.memory_space<vmem>>, %arg9: memref<1x1xf32, #tpu.memory_space<vmem>>, %arg10: memref<1x8x4x32xf32, #tpu.memory_space<vmem>>, %arg11: memref<32x32xbf16, #tpu.memory_space<vmem>>, %arg12: memref<32x32xbf16, #tpu.memory_space<vmem>>, %arg13: memref<32x32xbf16, #tpu.memory_space<vmem>>) attributes {dimension_semantics = [#tpu.dimension_semantics<parallel>], iteration_bounds = array<i64: 2>, scalar_prefetch = 0 : i64, scratch_operands = 3 : i64, tpu.core_type = #tpu.core_type<tc>, window_params = [{transform_indices = @transform_0, window_bounds = array<i64: 1, 8, 4, 32>}, {pipeline_mode = #tpu.pipeline_mode<synchronous>, transform_indices = @transform_1, window_bounds = array<i64: 1, 32>}, {pipeline_mode = #tpu.pipeline_mode<synchronous>, transform_indices = @transform_2, window_bounds = array<i64: 1, 32>}, {pipeline_mode = #tpu.pipeline_mode<synchronous>, transform_indices = @transform_3, window_bounds = array<i64: 32, 64>}, {pipeline_mode = #tpu.pipeline_mode<synchronous>, transform_indices = @transform_4, window_bounds = array<i64: 32, 32>}, {pipeline_mode = #tpu.pipeline_mode<synchronous>, transform_indices = @transform_5, window_bounds = array<i64: 32, 32>}, {pipeline_mode = #tpu.pipeline_mode<synchronous>, transform_indices = @transform_6, window_bounds = array<i64: 1, 32>}, {pipeline_mode = #tpu.pipeline_mode<synchronous>, transform_indices = @transform_7, window_bounds = array<i64: 1, 32>}, {pipeline_mode = #tpu.pipeline_mode<synchronous>, transform_indices = @transform_8, window_bounds = array<i64: 1, 1>}, {transform_indices = @transform_9, window_bounds = array<i64: 1, 8, 4, 32>}]} {
    %c0 = arith.constant 0 : index
    %c0_0 = arith.constant 0 : index
    %0 = vector.load %arg2[%c0, %c0_0] : memref<1x32xf32, #tpu.memory_space<vmem>>, vector<1x32xf32>
    %c0_1 = arith.constant 0 : index
    %c0_2 = arith.constant 0 : index
    %1 = vector.load %arg3[%c0_1, %c0_2] : memref<1x32xf32, #tpu.memory_space<vmem>>, vector<1x32xf32>
    %cst = arith.constant 0.000000e+00 : f32
    %2 = vector.broadcast %cst : f32 to vector<8x32xf32>
    %c0_3 = arith.constant 0 : index
    %c0_4 = arith.constant 0 : index
    %c0_5 = arith.constant 0 : index
    %c0_6 = arith.constant 0 : index
    %3 = vector.load %arg1[%c0_3, %c0_4, %c0_5, %c0_6] : memref<1x8x4x32xf32, #tpu.memory_space<vmem>>, vector<1x8x1x32xf32>
    %4 = vector.shape_cast %3 : vector<1x8x1x32xf32> to vector<8x32xf32>
    %cst_7 = arith.constant dense<0.000000e+00> : vector<8xf32>
    %5 = vector.multi_reduction <add>, %4, %cst_7 [1] : vector<8x32xf32> to vector<8xf32>
    %6 = vector.shape_cast %5 : vector<8xf32> to vector<8x1xf32>
    %cst_8 = arith.constant 3.200000e+01 : f32
    %7 = vector.broadcast %cst_8 : f32 to vector<8x1xf32>
    %8 = arith.divf %6, %7 : vector<8x1xf32>
    %9 = vector.broadcast %8 : vector<8x1xf32> to vector<8x32xf32>
    %10 = arith.subf %4, %9 : vector<8x32xf32>
    %11 = arith.mulf %10, %10 : vector<8x32xf32>
    %cst_9 = arith.constant dense<0.000000e+00> : vector<8xf32>
    %12 = vector.multi_reduction <add>, %11, %cst_9 [1] : vector<8x32xf32> to vector<8xf32>
    %13 = vector.shape_cast %12 : vector<8xf32> to vector<8x1xf32>
    %cst_10 = arith.constant 3.200000e+01 : f32
    %14 = vector.broadcast %cst_10 : f32 to vector<8x1xf32>
    %15 = arith.divf %13, %14 : vector<8x1xf32>
    %cst_11 = arith.constant 9.99999974E-6 : f32
    %16 = vector.broadcast %cst_11 : f32 to vector<8x1xf32>
    %17 = arith.addf %15, %16 : vector<8x1xf32>
    %18 = math.rsqrt %17 : vector<8x1xf32>
    %19 = vector.broadcast %18 : vector<8x1xf32> to vector<8x32xf32>
    %20 = arith.mulf %10, %19 : vector<8x32xf32>
    %21 = vector.broadcast %0 : vector<1x32xf32> to vector<8x32xf32>
    %22 = arith.mulf %20, %21 : vector<8x32xf32>
    %23 = vector.broadcast %1 : vector<1x32xf32> to vector<8x32xf32>
    %24 = arith.addf %22, %23 : vector<8x32xf32>
    %25 = arith.addf %2, %24 : vector<8x32xf32>
    %26 = arith.truncf %24 : vector<8x32xf32> to vector<8x32xbf16>
    %c0_12 = arith.constant 0 : index
    %c0_13 = arith.constant 0 : index
    %27 = vector.load %arg11[%c0_12, %c0_13] : memref<32x32xbf16, #tpu.memory_space<vmem>>, vector<8x32xbf16>
    tpu.vector_store %arg11[%c0_12, %c0_13], %26 {strides = array<i32>} : memref<32x32xbf16, #tpu.memory_space<vmem>>, vector<8x32xbf16>,
    %c0_14 = arith.constant 0 : index
    %c0_15 = arith.constant 0 : index
    %c1 = arith.constant 1 : index
    %c0_16 = arith.constant 0 : index
    %28 = vector.load %arg1[%c0_14, %c0_15, %c1, %c0_16] : memref<1x8x4x32xf32, #tpu.memory_space<vmem>>, vector<1x8x1x32xf32>
    %29 = vector.shape_cast %28 : vector<1x8x1x32xf32> to vector<8x32xf32>
    %cst_17 = arith.constant dense<0.000000e+00> : vector<8xf32>
    %30 = vector.multi_reduction <add>, %29, %cst_17 [1] : vector<8x32xf32> to vector<8xf32>
    %31 = vector.shape_cast %30 : vector<8xf32> to vector<8x1xf32>
    %cst_18 = arith.constant 3.200000e+01 : f32
    %32 = vector.broadcast %cst_18 : f32 to vector<8x1xf32>
    %33 = arith.divf %31, %32 : vector<8x1xf32>
    %34 = vector.broadcast %33 : vector<8x1xf32> to vector<8x32xf32>
    %35 = arith.subf %29, %34 : vector<8x32xf32>
    %36 = arith.mulf %35, %35 : vector<8x32xf32>
    %cst_19 = arith.constant dense<0.000000e+00> : vector<8xf32>
    %37 = vector.multi_reduction <add>, %36, %cst_19 [1] : vector<8x32xf32> to vector<8xf32>
    %38 = vector.shape_cast %37 : vector<8xf32> to vector<8x1xf32>
    %cst_20 = arith.constant 3.200000e+01 : f32
    %39 = vector.broadcast %cst_20 : f32 to vector<8x1xf32>
    %40 = arith.divf %38, %39 : vector<8x1xf32>
    %cst_21 = arith.constant 9.99999974E-6 : f32
    %41 = vector.broadcast %cst_21 : f32 to vector<8x1xf32>
    %42 = arith.addf %40, %41 : vector<8x1xf32>
    %43 = math.rsqrt %42 : vector<8x1xf32>
    %44 = vector.broadcast %43 : vector<8x1xf32> to vector<8x32xf32>
    %45 = arith.mulf %35, %44 : vector<8x32xf32>
    %46 = vector.broadcast %0 : vector<1x32xf32> to vector<8x32xf32>
    %47 = arith.mulf %45, %46 : vector<8x32xf32>
    %48 = vector.broadcast %1 : vector<1x32xf32> to vector<8x32xf32>
    %49 = arith.addf %47, %48 : vector<8x32xf32>
    %50 = arith.addf %25, %49 : vector<8x32xf32>
    %51 = arith.truncf %49 : vector<8x32xf32> to vector<8x32xbf16>
    %c8 = arith.constant 8 : index
    %c0_22 = arith.constant 0 : index
    %52 = vector.load %arg11[%c8, %c0_22] : memref<32x32xbf16, #tpu.memory_space<vmem>>, vector<8x32xbf16>
    tpu.vector_store %arg11[%c8, %c0_22], %51 {strides = array<i32>} : memref<32x32xbf16, #tpu.memory_space<vmem>>, vector<8x32xbf16>,
    %c0_23 = arith.constant 0 : index
    %c0_24 = arith.constant 0 : index
    %c2 = arith.constant 2 : index
    %c0_25 = arith.constant 0 : index
    %53 = vector.load %arg1[%c0_23, %c0_24, %c2, %c0_25] : memref<1x8x4x32xf32, #tpu.memory_space<vmem>>, vector<1x8x1x32xf32>
    %54 = vector.shape_cast %53 : vector<1x8x1x32xf32> to vector<8x32xf32>
    %cst_26 = arith.constant dense<0.000000e+00> : vector<8xf32>
    %55 = vector.multi_reduction <add>, %54, %cst_26 [1] : vector<8x32xf32> to vector<8xf32>
    %56 = vector.shape_cast %55 : vector<8xf32> to vector<8x1xf32>
    %cst_27 = arith.constant 3.200000e+01 : f32
    %57 = vector.broadcast %cst_27 : f32 to vector<8x1xf32>
    %58 = arith.divf %56, %57 : vector<8x1xf32>
    %59 = vector.broadcast %58 : vector<8x1xf32> to vector<8x32xf32>
    %60 = arith.subf %54, %59 : vector<8x32xf32>
    %61 = arith.mulf %60, %60 : vector<8x32xf32>
    %cst_28 = arith.constant dense<0.000000e+00> : vector<8xf32>
    %62 = vector.multi_reduction <add>, %61, %cst_28 [1] : vector<8x32xf32> to vector<8xf32>
    %63 = vector.shape_cast %62 : vector<8xf32> to vector<8x1xf32>
    %cst_29 = arith.constant 3.200000e+01 : f32
    %64 = vector.broadcast %cst_29 : f32 to vector<8x1xf32>
    %65 = arith.divf %63, %64 : vector<8x1xf32>
    %cst_30 = arith.constant 9.99999974E-6 : f32
    %66 = vector.broadcast %cst_30 : f32 to vector<8x1xf32>
    %67 = arith.addf %65, %66 : vector<8x1xf32>
    %68 = math.rsqrt %67 : vector<8x1xf32>
    %69 = vector.broadcast %68 : vector<8x1xf32> to vector<8x32xf32>
    %70 = arith.mulf %60, %69 : vector<8x32xf32>
    %71 = vector.broadcast %0 : vector<1x32xf32> to vector<8x32xf32>
    %72 = arith.mulf %70, %71 : vector<8x32xf32>
    %73 = vector.broadcast %1 : vector<1x32xf32> to vector<8x32xf32>
    %74 = arith.addf %72, %73 : vector<8x32xf32>
    %75 = arith.addf %50, %74 : vector<8x32xf32>
    %76 = arith.truncf %74 : vector<8x32xf32> to vector<8x32xbf16>
    %c16 = arith.constant 16 : index
    %c0_31 = arith.constant 0 : index
    %77 = vector.load %arg11[%c16, %c0_31] : memref<32x32xbf16, #tpu.memory_space<vmem>>, vector<8x32xbf16>
    tpu.vector_store %arg11[%c16, %c0_31], %76 {strides = array<i32>} : memref<32x32xbf16, #tpu.memory_space<vmem>>, vector<8x32xbf16>,
    %c0_32 = arith.constant 0 : index
    %c0_33 = arith.constant 0 : index
    %c3 = arith.constant 3 : index
    %c0_34 = arith.constant 0 : index
    %78 = vector.load %arg1[%c0_32, %c0_33, %c3, %c0_34] : memref<1x8x4x32xf32, #tpu.memory_space<vmem>>, vector<1x8x1x32xf32>
    %79 = vector.shape_cast %78 : vector<1x8x1x32xf32> to vector<8x32xf32>
    %cst_35 = arith.constant dense<0.000000e+00> : vector<8xf32>
    %80 = vector.multi_reduction <add>, %79, %cst_35 [1] : vector<8x32xf32> to vector<8xf32>
    %81 = vector.shape_cast %80 : vector<8xf32> to vector<8x1xf32>
    %cst_36 = arith.constant 3.200000e+01 : f32
    %82 = vector.broadcast %cst_36 : f32 to vector<8x1xf32>
    %83 = arith.divf %81, %82 : vector<8x1xf32>
    %84 = vector.broadcast %83 : vector<8x1xf32> to vector<8x32xf32>
    %85 = arith.subf %79, %84 : vector<8x32xf32>
    %86 = arith.mulf %85, %85 : vector<8x32xf32>
    %cst_37 = arith.constant dense<0.000000e+00> : vector<8xf32>
    %87 = vector.multi_reduction <add>, %86, %cst_37 [1] : vector<8x32xf32> to vector<8xf32>
    %88 = vector.shape_cast %87 : vector<8xf32> to vector<8x1xf32>
    %cst_38 = arith.constant 3.200000e+01 : f32
    %89 = vector.broadcast %cst_38 : f32 to vector<8x1xf32>
    %90 = arith.divf %88, %89 : vector<8x1xf32>
    %cst_39 = arith.constant 9.99999974E-6 : f32
    %91 = vector.broadcast %cst_39 : f32 to vector<8x1xf32>
    %92 = arith.addf %90, %91 : vector<8x1xf32>
    %93 = math.rsqrt %92 : vector<8x1xf32>
    %94 = vector.broadcast %93 : vector<8x1xf32> to vector<8x32xf32>
    %95 = arith.mulf %85, %94 : vector<8x32xf32>
    %96 = vector.broadcast %0 : vector<1x32xf32> to vector<8x32xf32>
    %97 = arith.mulf %95, %96 : vector<8x32xf32>
    %98 = vector.broadcast %1 : vector<1x32xf32> to vector<8x32xf32>
    %99 = arith.addf %97, %98 : vector<8x32xf32>
    %100 = arith.addf %75, %99 : vector<8x32xf32>
    %101 = arith.truncf %99 : vector<8x32xf32> to vector<8x32xbf16>
    %c24 = arith.constant 24 : index
    %c0_40 = arith.constant 0 : index
    %102 = vector.load %arg11[%c24, %c0_40] : memref<32x32xbf16, #tpu.memory_space<vmem>>, vector<8x32xbf16>
    tpu.vector_store %arg11[%c24, %c0_40], %101 {strides = array<i32>} : memref<32x32xbf16, #tpu.memory_space<vmem>>, vector<8x32xbf16>,
    %cst_41 = arith.constant 2.500000e-01 : f32
    %103 = vector.broadcast %cst_41 : f32 to vector<8x32xf32>
    %104 = arith.mulf %100, %103 : vector<8x32xf32>
    %105 = arith.truncf %104 : vector<8x32xf32> to vector<8x32xbf16>
    %c0_42 = arith.constant 0 : index
    %c0_43 = arith.constant 0 : index
    %106 = vector.load %arg4[%c0_42, %c0_43] : memref<32x64xbf16, #tpu.memory_space<vmem>>, vector<32x64xbf16>
    %cst_44 = arith.constant dense<0.000000e+00> : vector<8x64xf32>
    %107 = tpu.matmul %105, %106, %cst_44 {dimension_numbers = #tpu.dot_dimension_numbers<[1], [0], [0], [1], [0, 0, 1, 1], [], []>} : vector<8x32xbf16>, vector<32x64xbf16>, vector<8x64xf32> -> vector<8x64xf32>
    %108 = vector.extract_strided_slice %107 {offsets = [0, 0], sizes = [8, 8], strides = [1, 1]} : vector<8x64xf32> to vector<8x8xf32>
    %109 = arith.truncf %108 : vector<8x8xf32> to vector<8x8xbf16>
    %110 = vector.extract_strided_slice %107 {offsets = [0, 32], sizes = [8, 8], strides = [1, 1]} : vector<8x64xf32> to vector<8x8xf32>
    %111 = arith.truncf %110 : vector<8x8xf32> to vector<8x8xbf16>
    %cst_45 = arith.constant dense<0.000000e+00> : vector<8x8xf32>
    %112 = tpu.matmul %109, %111, %cst_45 {dimension_numbers = #tpu.dot_dimension_numbers<[1], [1], [0], [0], [0, 0, 1, 0], [], []>} : vector<8x8xbf16>, vector<8x8xbf16>, vector<8x8xf32> -> vector<8x8xf32>
    %cst_46 = arith.constant 0.353553385 : f32
    %113 = vector.broadcast %cst_46 : f32 to vector<8x8xf32>
    %114 = arith.mulf %112, %113 : vector<8x8xf32>
    %cst_47 = arith.constant dense<0xFF800000> : vector<8xf32>
    %115 = vector.multi_reduction <maximumf>, %114, %cst_47 [1] : vector<8x8xf32> to vector<8xf32>
    %116 = vector.shape_cast %115 : vector<8xf32> to vector<8x1xf32>
    %117 = vector.broadcast %116 : vector<8x1xf32> to vector<8x8xf32>
    %118 = arith.subf %114, %117 : vector<8x8xf32>
    %119 = math.exp %118 : vector<8x8xf32>
    %cst_48 = arith.constant dense<0.000000e+00> : vector<8xf32>
    %120 = vector.multi_reduction <add>, %119, %cst_48 [1] : vector<8x8xf32> to vector<8xf32>
    %121 = vector.shape_cast %120 : vector<8xf32> to vector<8x1xf32>
    %122 = tpu.reciprocal %121 {approx = true} : vector<8x1xf32> -> vector<8x1xf32>
    %123 = vector.broadcast %122 : vector<8x1xf32> to vector<8x8xf32>
    %124 = arith.mulf %119, %123 : vector<8x8xf32>
    %125 = arith.truncf %124 : vector<8x8xf32> to vector<8x8xbf16>
    %126 = vector.extract_strided_slice %107 {offsets = [0, 8], sizes = [8, 8], strides = [1, 1]} : vector<8x64xf32> to vector<8x8xf32>
    %127 = arith.truncf %126 : vector<8x8xf32> to vector<8x8xbf16>
    %128 = vector.extract_strided_slice %107 {offsets = [0, 40], sizes = [8, 8], strides = [1, 1]} : vector<8x64xf32> to vector<8x8xf32>
    %129 = arith.truncf %128 : vector<8x8xf32> to vector<8x8xbf16>
    %cst_49 = arith.constant dense<0.000000e+00> : vector<8x8xf32>
    %130 = tpu.matmul %127, %129, %cst_49 {dimension_numbers = #tpu.dot_dimension_numbers<[1], [1], [0], [0], [0, 0, 1, 0], [], []>} : vector<8x8xbf16>, vector<8x8xbf16>, vector<8x8xf32> -> vector<8x8xf32>
    %cst_50 = arith.constant 0.353553385 : f32
    %131 = vector.broadcast %cst_50 : f32 to vector<8x8xf32>
    %132 = arith.mulf %130, %131 : vector<8x8xf32>
    %cst_51 = arith.constant dense<0xFF800000> : vector<8xf32>
    %133 = vector.multi_reduction <maximumf>, %132, %cst_51 [1] : vector<8x8xf32> to vector<8xf32>
    %134 = vector.shape_cast %133 : vector<8xf32> to vector<8x1xf32>
    %135 = vector.broadcast %134 : vector<8x1xf32> to vector<8x8xf32>
    %136 = arith.subf %132, %135 : vector<8x8xf32>
    %137 = math.exp %136 : vector<8x8xf32>
    %cst_52 = arith.constant dense<0.000000e+00> : vector<8xf32>
    %138 = vector.multi_reduction <add>, %137, %cst_52 [1] : vector<8x8xf32> to vector<8xf32>
    %139 = vector.shape_cast %138 : vector<8xf32> to vector<8x1xf32>
    %140 = tpu.reciprocal %139 {approx = true} : vector<8x1xf32> -> vector<8x1xf32>
    %141 = vector.broadcast %140 : vector<8x1xf32> to vector<8x8xf32>
    %142 = arith.mulf %137, %141 : vector<8x8xf32>
    %143 = arith.truncf %142 : vector<8x8xf32> to vector<8x8xbf16>
    %144 = vector.extract_strided_slice %107 {offsets = [0, 16], sizes = [8, 8], strides = [1, 1]} : vector<8x64xf32> to vector<8x8xf32>
    %145 = arith.truncf %144 : vector<8x8xf32> to vector<8x8xbf16>
    %146 = vector.extract_strided_slice %107 {offsets = [0, 48], sizes = [8, 8], strides = [1, 1]} : vector<8x64xf32> to vector<8x8xf32>
    %147 = arith.truncf %146 : vector<8x8xf32> to vector<8x8xbf16>
    %cst_53 = arith.constant dense<0.000000e+00> : vector<8x8xf32>
    %148 = tpu.matmul %145, %147, %cst_53 {dimension_numbers = #tpu.dot_dimension_numbers<[1], [1], [0], [0], [0, 0, 1, 0], [], []>} : vector<8x8xbf16>, vector<8x8xbf16>, vector<8x8xf32> -> vector<8x8xf32>
    %cst_54 = arith.constant 0.353553385 : f32
    %149 = vector.broadcast %cst_54 : f32 to vector<8x8xf32>
    %150 = arith.mulf %148, %149 : vector<8x8xf32>
    %cst_55 = arith.constant dense<0xFF800000> : vector<8xf32>
    %151 = vector.multi_reduction <maximumf>, %150, %cst_55 [1] : vector<8x8xf32> to vector<8xf32>
    %152 = vector.shape_cast %151 : vector<8xf32> to vector<8x1xf32>
    %153 = vector.broadcast %152 : vector<8x1xf32> to vector<8x8xf32>
    %154 = arith.subf %150, %153 : vector<8x8xf32>
    %155 = math.exp %154 : vector<8x8xf32>
    %cst_56 = arith.constant dense<0.000000e+00> : vector<8xf32>
    %156 = vector.multi_reduction <add>, %155, %cst_56 [1] : vector<8x8xf32> to vector<8xf32>
    %157 = vector.shape_cast %156 : vector<8xf32> to vector<8x1xf32>
    %158 = tpu.reciprocal %157 {approx = true} : vector<8x1xf32> -> vector<8x1xf32>
    %159 = vector.broadcast %158 : vector<8x1xf32> to vector<8x8xf32>
    %160 = arith.mulf %155, %159 : vector<8x8xf32>
    %161 = arith.truncf %160 : vector<8x8xf32> to vector<8x8xbf16>
    %162 = vector.extract_strided_slice %107 {offsets = [0, 24], sizes = [8, 8], strides = [1, 1]} : vector<8x64xf32> to vector<8x8xf32>
    %163 = arith.truncf %162 : vector<8x8xf32> to vector<8x8xbf16>
    %164 = vector.extract_strided_slice %107 {offsets = [0, 56], sizes = [8, 8], strides = [1, 1]} : vector<8x64xf32> to vector<8x8xf32>
    %165 = arith.truncf %164 : vector<8x8xf32> to vector<8x8xbf16>
    %cst_57 = arith.constant dense<0.000000e+00> : vector<8x8xf32>
    %166 = tpu.matmul %163, %165, %cst_57 {dimension_numbers = #tpu.dot_dimension_numbers<[1], [1], [0], [0], [0, 0, 1, 0], [], []>} : vector<8x8xbf16>, vector<8x8xbf16>, vector<8x8xf32> -> vector<8x8xf32>
    %cst_58 = arith.constant 0.353553385 : f32
    %167 = vector.broadcast %cst_58 : f32 to vector<8x8xf32>
    %168 = arith.mulf %166, %167 : vector<8x8xf32>
    %cst_59 = arith.constant dense<0xFF800000> : vector<8xf32>
    %169 = vector.multi_reduction <maximumf>, %168, %cst_59 [1] : vector<8x8xf32> to vector<8xf32>
    %170 = vector.shape_cast %169 : vector<8xf32> to vector<8x1xf32>
    %171 = vector.broadcast %170 : vector<8x1xf32> to vector<8x8xf32>
    %172 = arith.subf %168, %171 : vector<8x8xf32>
    %173 = math.exp %172 : vector<8x8xf32>
    %cst_60 = arith.constant dense<0.000000e+00> : vector<8xf32>
    %174 = vector.multi_reduction <add>, %173, %cst_60 [1] : vector<8x8xf32> to vector<8xf32>
    %175 = vector.shape_cast %174 : vector<8xf32> to vector<8x1xf32>
    %176 = tpu.reciprocal %175 {approx = true} : vector<8x1xf32> -> vector<8x1xf32>
    %177 = vector.broadcast %176 : vector<8x1xf32> to vector<8x8xf32>
    %178 = arith.mulf %173, %177 : vector<8x8xf32>
    %179 = arith.truncf %178 : vector<8x8xf32> to vector<8x8xbf16>
    %c0_61 = arith.constant 0 : index
    %c0_62 = arith.constant 0 : index
    %180 = vector.load %arg11[%c0_61, %c0_62] : memref<32x32xbf16, #tpu.memory_space<vmem>>, vector<32x32xbf16>
    %c0_63 = arith.constant 0 : index
    %c0_64 = arith.constant 0 : index
    %181 = vector.load %arg5[%c0_63, %c0_64] : memref<32x32xbf16, #tpu.memory_space<vmem>>, vector<32x32xbf16>
    %cst_65 = arith.constant dense<0.000000e+00> : vector<32x32xf32>
    %182 = tpu.matmul %180, %181, %cst_65 {dimension_numbers = #tpu.dot_dimension_numbers<[1], [0], [0], [1], [0, 0, 1, 1], [], []>} : vector<32x32xbf16>, vector<32x32xbf16>, vector<32x32xf32> -> vector<32x32xf32>
    %183 = arith.truncf %182 : vector<32x32xf32> to vector<32x32xbf16>
    %c0_66 = arith.constant 0 : index
    %c0_67 = arith.constant 0 : index
    %184 = vector.load %arg12[%c0_66, %c0_67] : memref<32x32xbf16, #tpu.memory_space<vmem>>, vector<32x32xbf16>
    tpu.vector_store %arg12[%c0_66, %c0_67], %183 {strides = array<i32>} : memref<32x32xbf16, #tpu.memory_space<vmem>>, vector<32x32xbf16>,
    %c0_68 = arith.constant 0 : index
    %c0_69 = arith.constant 0 : index
    %185 = vector.load %arg12[%c0_68, %c0_69] : memref<32x32xbf16, #tpu.memory_space<vmem>>, vector<8x8xbf16>
    %c8_70 = arith.constant 8 : index
    %c0_71 = arith.constant 0 : index
    %186 = vector.load %arg12[%c8_70, %c0_71] : memref<32x32xbf16, #tpu.memory_space<vmem>>, vector<8x8xbf16>
    %c16_72 = arith.constant 16 : index
    %c0_73 = arith.constant 0 : index
    %187 = vector.load %arg12[%c16_72, %c0_73] : memref<32x32xbf16, #tpu.memory_space<vmem>>, vector<8x8xbf16>
    %c24_74 = arith.constant 24 : index
    %c0_75 = arith.constant 0 : index
    %188 = vector.load %arg12[%c24_74, %c0_75] : memref<32x32xbf16, #tpu.memory_space<vmem>>, vector<8x8xbf16>
    %189 = tpu.concatenate %185, %186, %187, %188 in 1 : vector<8x8xbf16>, vector<8x8xbf16>, vector<8x8xbf16>, vector<8x8xbf16> -> vector<8x32xbf16>
    %cst_76 = arith.constant dense<0.000000e+00> : vector<8x32xf32>
    %190 = tpu.matmul %125, %189, %cst_76 {dimension_numbers = #tpu.dot_dimension_numbers<[1], [0], [0], [1], [0, 0, 1, 1], [], []>} : vector<8x8xbf16>, vector<8x32xbf16>, vector<8x32xf32> -> vector<8x32xf32>
    %191 = arith.truncf %190 : vector<8x32xf32> to vector<8x32xbf16>
    %192 = vector.extract_strided_slice %191 {offsets = [0, 0], sizes = [8, 8], strides = [1, 1]} : vector<8x32xbf16> to vector<8x8xbf16>
    %c0_77 = arith.constant 0 : index
    %c0_78 = arith.constant 0 : index
    %193 = vector.load %arg13[%c0_77, %c0_78] : memref<32x32xbf16, #tpu.memory_space<vmem>>, vector<8x8xbf16>
    tpu.vector_store %arg13[%c0_77, %c0_78], %192 {strides = array<i32>} : memref<32x32xbf16, #tpu.memory_space<vmem>>, vector<8x8xbf16>,
    %194 = vector.extract_strided_slice %191 {offsets = [0, 8], sizes = [8, 8], strides = [1, 1]} : vector<8x32xbf16> to vector<8x8xbf16>
    %c8_79 = arith.constant 8 : index
    %c0_80 = arith.constant 0 : index
    %195 = vector.load %arg13[%c8_79, %c0_80] : memref<32x32xbf16, #tpu.memory_space<vmem>>, vector<8x8xbf16>
    tpu.vector_store %arg13[%c8_79, %c0_80], %194 {strides = array<i32>} : memref<32x32xbf16, #tpu.memory_space<vmem>>, vector<8x8xbf16>,
    %196 = vector.extract_strided_slice %191 {offsets = [0, 16], sizes = [8, 8], strides = [1, 1]} : vector<8x32xbf16> to vector<8x8xbf16>
    %c16_81 = arith.constant 16 : index
    %c0_82 = arith.constant 0 : index
    %197 = vector.load %arg13[%c16_81, %c0_82] : memref<32x32xbf16, #tpu.memory_space<vmem>>, vector<8x8xbf16>
    tpu.vector_store %arg13[%c16_81, %c0_82], %196 {strides = array<i32>} : memref<32x32xbf16, #tpu.memory_space<vmem>>, vector<8x8xbf16>,
    %198 = vector.extract_strided_slice %191 {offsets = [0, 24], sizes = [8, 8], strides = [1, 1]} : vector<8x32xbf16> to vector<8x8xbf16>
    %c24_83 = arith.constant 24 : index
    %c0_84 = arith.constant 0 : index
    %199 = vector.load %arg13[%c24_83, %c0_84] : memref<32x32xbf16, #tpu.memory_space<vmem>>, vector<8x8xbf16>
    tpu.vector_store %arg13[%c24_83, %c0_84], %198 {strides = array<i32>} : memref<32x32xbf16, #tpu.memory_space<vmem>>, vector<8x8xbf16>,
    %c0_85 = arith.constant 0 : index
    %c8_86 = arith.constant 8 : index
    %200 = vector.load %arg12[%c0_85, %c8_86] : memref<32x32xbf16, #tpu.memory_space<vmem>>, vector<8x8xbf16>
    %c8_87 = arith.constant 8 : index
    %c8_88 = arith.constant 8 : index
    %201 = vector.load %arg12[%c8_87, %c8_88] : memref<32x32xbf16, #tpu.memory_space<vmem>>, vector<8x8xbf16>
    %c16_89 = arith.constant 16 : index
    %c8_90 = arith.constant 8 : index
    %202 = vector.load %arg12[%c16_89, %c8_90] : memref<32x32xbf16, #tpu.memory_space<vmem>>, vector<8x8xbf16>
    %c24_91 = arith.constant 24 : index
    %c8_92 = arith.constant 8 : index
    %203 = vector.load %arg12[%c24_91, %c8_92] : memref<32x32xbf16, #tpu.memory_space<vmem>>, vector<8x8xbf16>
    %204 = tpu.concatenate %200, %201, %202, %203 in 1 : vector<8x8xbf16>, vector<8x8xbf16>, vector<8x8xbf16>, vector<8x8xbf16> -> vector<8x32xbf16>
    %cst_93 = arith.constant dense<0.000000e+00> : vector<8x32xf32>
    %205 = tpu.matmul %143, %204, %cst_93 {dimension_numbers = #tpu.dot_dimension_numbers<[1], [0], [0], [1], [0, 0, 1, 1], [], []>} : vector<8x8xbf16>, vector<8x32xbf16>, vector<8x32xf32> -> vector<8x32xf32>
    %206 = arith.truncf %205 : vector<8x32xf32> to vector<8x32xbf16>
    %207 = vector.extract_strided_slice %206 {offsets = [0, 0], sizes = [8, 8], strides = [1, 1]} : vector<8x32xbf16> to vector<8x8xbf16>
    %c0_94 = arith.constant 0 : index
    %c8_95 = arith.constant 8 : index
    %208 = vector.load %arg13[%c0_94, %c8_95] : memref<32x32xbf16, #tpu.memory_space<vmem>>, vector<8x8xbf16>
    tpu.vector_store %arg13[%c0_94, %c8_95], %207 {strides = array<i32>} : memref<32x32xbf16, #tpu.memory_space<vmem>>, vector<8x8xbf16>,
    %209 = vector.extract_strided_slice %206 {offsets = [0, 8], sizes = [8, 8], strides = [1, 1]} : vector<8x32xbf16> to vector<8x8xbf16>
    %c8_96 = arith.constant 8 : index
    %c8_97 = arith.constant 8 : index
    %210 = vector.load %arg13[%c8_96, %c8_97] : memref<32x32xbf16, #tpu.memory_space<vmem>>, vector<8x8xbf16>
    tpu.vector_store %arg13[%c8_96, %c8_97], %209 {strides = array<i32>} : memref<32x32xbf16, #tpu.memory_space<vmem>>, vector<8x8xbf16>,
    %211 = vector.extract_strided_slice %206 {offsets = [0, 16], sizes = [8, 8], strides = [1, 1]} : vector<8x32xbf16> to vector<8x8xbf16>
    %c16_98 = arith.constant 16 : index
    %c8_99 = arith.constant 8 : index
    %212 = vector.load %arg13[%c16_98, %c8_99] : memref<32x32xbf16, #tpu.memory_space<vmem>>, vector<8x8xbf16>
    tpu.vector_store %arg13[%c16_98, %c8_99], %211 {strides = array<i32>} : memref<32x32xbf16, #tpu.memory_space<vmem>>, vector<8x8xbf16>,
    %213 = vector.extract_strided_slice %206 {offsets = [0, 24], sizes = [8, 8], strides = [1, 1]} : vector<8x32xbf16> to vector<8x8xbf16>
    %c24_100 = arith.constant 24 : index
    %c8_101 = arith.constant 8 : index
    %214 = vector.load %arg13[%c24_100, %c8_101] : memref<32x32xbf16, #tpu.memory_space<vmem>>, vector<8x8xbf16>
    tpu.vector_store %arg13[%c24_100, %c8_101], %213 {strides = array<i32>} : memref<32x32xbf16, #tpu.memory_space<vmem>>, vector<8x8xbf16>,
    %c0_102 = arith.constant 0 : index
    %c16_103 = arith.constant 16 : index
    %215 = vector.load %arg12[%c0_102, %c16_103] : memref<32x32xbf16, #tpu.memory_space<vmem>>, vector<8x8xbf16>
    %c8_104 = arith.constant 8 : index
    %c16_105 = arith.constant 16 : index
    %216 = vector.load %arg12[%c8_104, %c16_105] : memref<32x32xbf16, #tpu.memory_space<vmem>>, vector<8x8xbf16>
    %c16_106 = arith.constant 16 : index
    %c16_107 = arith.constant 16 : index
    %217 = vector.load %arg12[%c16_106, %c16_107] : memref<32x32xbf16, #tpu.memory_space<vmem>>, vector<8x8xbf16>
    %c24_108 = arith.constant 24 : index
    %c16_109 = arith.constant 16 : index
    %218 = vector.load %arg12[%c24_108, %c16_109] : memref<32x32xbf16, #tpu.memory_space<vmem>>, vector<8x8xbf16>
    %219 = tpu.concatenate %215, %216, %217, %218 in 1 : vector<8x8xbf16>, vector<8x8xbf16>, vector<8x8xbf16>, vector<8x8xbf16> -> vector<8x32xbf16>
    %cst_110 = arith.constant dense<0.000000e+00> : vector<8x32xf32>
    %220 = tpu.matmul %161, %219, %cst_110 {dimension_numbers = #tpu.dot_dimension_numbers<[1], [0], [0], [1], [0, 0, 1, 1], [], []>} : vector<8x8xbf16>, vector<8x32xbf16>, vector<8x32xf32> -> vector<8x32xf32>
    %221 = arith.truncf %220 : vector<8x32xf32> to vector<8x32xbf16>
    %222 = vector.extract_strided_slice %221 {offsets = [0, 0], sizes = [8, 8], strides = [1, 1]} : vector<8x32xbf16> to vector<8x8xbf16>
    %c0_111 = arith.constant 0 : index
    %c16_112 = arith.constant 16 : index
    %223 = vector.load %arg13[%c0_111, %c16_112] : memref<32x32xbf16, #tpu.memory_space<vmem>>, vector<8x8xbf16>
    tpu.vector_store %arg13[%c0_111, %c16_112], %222 {strides = array<i32>} : memref<32x32xbf16, #tpu.memory_space<vmem>>, vector<8x8xbf16>,
    %224 = vector.extract_strided_slice %221 {offsets = [0, 8], sizes = [8, 8], strides = [1, 1]} : vector<8x32xbf16> to vector<8x8xbf16>
    %c8_113 = arith.constant 8 : index
    %c16_114 = arith.constant 16 : index
    %225 = vector.load %arg13[%c8_113, %c16_114] : memref<32x32xbf16, #tpu.memory_space<vmem>>, vector<8x8xbf16>
    tpu.vector_store %arg13[%c8_113, %c16_114], %224 {strides = array<i32>} : memref<32x32xbf16, #tpu.memory_space<vmem>>, vector<8x8xbf16>,
    %226 = vector.extract_strided_slice %221 {offsets = [0, 16], sizes = [8, 8], strides = [1, 1]} : vector<8x32xbf16> to vector<8x8xbf16>
    %c16_115 = arith.constant 16 : index
    %c16_116 = arith.constant 16 : index
    %227 = vector.load %arg13[%c16_115, %c16_116] : memref<32x32xbf16, #tpu.memory_space<vmem>>, vector<8x8xbf16>
    tpu.vector_store %arg13[%c16_115, %c16_116], %226 {strides = array<i32>} : memref<32x32xbf16, #tpu.memory_space<vmem>>, vector<8x8xbf16>,
    %228 = vector.extract_strided_slice %221 {offsets = [0, 24], sizes = [8, 8], strides = [1, 1]} : vector<8x32xbf16> to vector<8x8xbf16>
    %c24_117 = arith.constant 24 : index
    %c16_118 = arith.constant 16 : index
    %229 = vector.load %arg13[%c24_117, %c16_118] : memref<32x32xbf16, #tpu.memory_space<vmem>>, vector<8x8xbf16>
    tpu.vector_store %arg13[%c24_117, %c16_118], %228 {strides = array<i32>} : memref<32x32xbf16, #tpu.memory_space<vmem>>, vector<8x8xbf16>,
    %c0_119 = arith.constant 0 : index
    %c24_120 = arith.constant 24 : index
    %230 = vector.load %arg12[%c0_119, %c24_120] : memref<32x32xbf16, #tpu.memory_space<vmem>>, vector<8x8xbf16>
    %c8_121 = arith.constant 8 : index
    %c24_122 = arith.constant 24 : index
    %231 = vector.load %arg12[%c8_121, %c24_122] : memref<32x32xbf16, #tpu.memory_space<vmem>>, vector<8x8xbf16>
    %c16_123 = arith.constant 16 : index
    %c24_124 = arith.constant 24 : index
    %232 = vector.load %arg12[%c16_123, %c24_124] : memref<32x32xbf16, #tpu.memory_space<vmem>>, vector<8x8xbf16>
    %c24_125 = arith.constant 24 : index
    %c24_126 = arith.constant 24 : index
    %233 = vector.load %arg12[%c24_125, %c24_126] : memref<32x32xbf16, #tpu.memory_space<vmem>>, vector<8x8xbf16>
    %234 = tpu.concatenate %230, %231, %232, %233 in 1 : vector<8x8xbf16>, vector<8x8xbf16>, vector<8x8xbf16>, vector<8x8xbf16> -> vector<8x32xbf16>
    %cst_127 = arith.constant dense<0.000000e+00> : vector<8x32xf32>
    %235 = tpu.matmul %179, %234, %cst_127 {dimension_numbers = #tpu.dot_dimension_numbers<[1], [0], [0], [1], [0, 0, 1, 1], [], []>} : vector<8x8xbf16>, vector<8x32xbf16>, vector<8x32xf32> -> vector<8x32xf32>
    %236 = arith.truncf %235 : vector<8x32xf32> to vector<8x32xbf16>
    %237 = vector.extract_strided_slice %236 {offsets = [0, 0], sizes = [8, 8], strides = [1, 1]} : vector<8x32xbf16> to vector<8x8xbf16>
    %c0_128 = arith.constant 0 : index
    %c24_129 = arith.constant 24 : index
    %238 = vector.load %arg13[%c0_128, %c24_129] : memref<32x32xbf16, #tpu.memory_space<vmem>>, vector<8x8xbf16>
    tpu.vector_store %arg13[%c0_128, %c24_129], %237 {strides = array<i32>} : memref<32x32xbf16, #tpu.memory_space<vmem>>, vector<8x8xbf16>,
    %239 = vector.extract_strided_slice %236 {offsets = [0, 8], sizes = [8, 8], strides = [1, 1]} : vector<8x32xbf16> to vector<8x8xbf16>
    %c8_130 = arith.constant 8 : index
    %c24_131 = arith.constant 24 : index
    %240 = vector.load %arg13[%c8_130, %c24_131] : memref<32x32xbf16, #tpu.memory_space<vmem>>, vector<8x8xbf16>
    tpu.vector_store %arg13[%c8_130, %c24_131], %239 {strides = array<i32>} : memref<32x32xbf16, #tpu.memory_space<vmem>>, vector<8x8xbf16>,
    %241 = vector.extract_strided_slice %236 {offsets = [0, 16], sizes = [8, 8], strides = [1, 1]} : vector<8x32xbf16> to vector<8x8xbf16>
    %c16_132 = arith.constant 16 : index
    %c24_133 = arith.constant 24 : index
    %242 = vector.load %arg13[%c16_132, %c24_133] : memref<32x32xbf16, #tpu.memory_space<vmem>>, vector<8x8xbf16>
    tpu.vector_store %arg13[%c16_132, %c24_133], %241 {strides = array<i32>} : memref<32x32xbf16, #tpu.memory_space<vmem>>, vector<8x8xbf16>,
    %243 = vector.extract_strided_slice %236 {offsets = [0, 24], sizes = [8, 8], strides = [1, 1]} : vector<8x32xbf16> to vector<8x8xbf16>
    %c24_134 = arith.constant 24 : index
    %c24_135 = arith.constant 24 : index
    %244 = vector.load %arg13[%c24_134, %c24_135] : memref<32x32xbf16, #tpu.memory_space<vmem>>, vector<8x8xbf16>
    tpu.vector_store %arg13[%c24_134, %c24_135], %243 {strides = array<i32>} : memref<32x32xbf16, #tpu.memory_space<vmem>>, vector<8x8xbf16>,
    %c0_136 = arith.constant 0 : index
    %c0_137 = arith.constant 0 : index
    %245 = vector.load %arg13[%c0_136, %c0_137] : memref<32x32xbf16, #tpu.memory_space<vmem>>, vector<32x32xbf16>
    %c0_138 = arith.constant 0 : index
    %c0_139 = arith.constant 0 : index
    %246 = vector.load %arg6[%c0_138, %c0_139] : memref<32x32xbf16, #tpu.memory_space<vmem>>, vector<32x32xbf16>
    %cst_140 = arith.constant dense<0.000000e+00> : vector<32x32xf32>
    %247 = tpu.matmul %245, %246, %cst_140 {dimension_numbers = #tpu.dot_dimension_numbers<[1], [0], [0], [1], [0, 0, 1, 1], [], []>} : vector<32x32xbf16>, vector<32x32xbf16>, vector<32x32xf32> -> vector<32x32xf32>
    %c0_141 = arith.constant 0 : index
    %c0_142 = arith.constant 0 : index
    %248 = vector.load %arg7[%c0_141, %c0_142] : memref<1x32xf32, #tpu.memory_space<vmem>>, vector<1x32xf32>
    %249 = vector.broadcast %248 : vector<1x32xf32> to vector<32x32xf32>
    %250 = arith.addf %247, %249 : vector<32x32xf32>
    %c0_143 = arith.constant 0 : index
    %c0_144 = arith.constant 0 : index
    %251 = vector.load %arg8[%c0_143, %c0_144] : memref<1x32xf32, #tpu.memory_space<vmem>>, vector<1x32xf32>
    %c0_145 = arith.constant 0 : index
    %c0_146 = arith.constant 0 : index
    %252 = vector.load %arg9[%c0_145, %c0_146] : memref<1x1xf32, #tpu.memory_space<vmem>>, vector<1x1xf32>
    %253 = vector.extract_strided_slice %250 {offsets = [0, 0], sizes = [8, 32], strides = [1, 1]} : vector<32x32xf32> to vector<8x32xf32>
    %254 = vector.broadcast %251 : vector<1x32xf32> to vector<8x32xf32>
    %255 = arith.mulf %253, %254 : vector<8x32xf32>
    %cst_147 = arith.constant dense<0.000000e+00> : vector<8xf32>
    %256 = vector.multi_reduction <add>, %255, %cst_147 [1] : vector<8x32xf32> to vector<8xf32>
    %257 = vector.shape_cast %256 : vector<8xf32> to vector<8x1xf32>
    %258 = vector.broadcast %252 : vector<1x1xf32> to vector<8x1xf32>
    %259 = arith.addf %257, %258 : vector<8x1xf32>
    %260 = arith.negf %259 : vector<8x1xf32>
    %261 = math.exp %260 : vector<8x1xf32>
    %cst_148 = arith.constant 1.000000e+00 : f32
    %262 = vector.broadcast %cst_148 : f32 to vector<8x1xf32>
    %263 = arith.addf %262, %261 : vector<8x1xf32>
    %264 = arith.divf %262, %263 : vector<8x1xf32>
    %265 = vector.broadcast %264 : vector<8x1xf32> to vector<8x32xf32>
    %266 = arith.mulf %265, %253 : vector<8x32xf32>
    %c0_149 = arith.constant 0 : index
    %c0_150 = arith.constant 0 : index
    %c0_151 = arith.constant 0 : index
    %c0_152 = arith.constant 0 : index
    %267 = vector.load %arg1[%c0_149, %c0_150, %c0_151, %c0_152] : memref<1x8x4x32xf32, #tpu.memory_space<vmem>>, vector<1x8x1x32xf32>
    %268 = vector.shape_cast %267 : vector<1x8x1x32xf32> to vector<8x32xf32>
    %269 = arith.addf %268, %266 : vector<8x32xf32>
    %c0_153 = arith.constant 0 : index
    %c0_154 = arith.constant 0 : index
    %c0_155 = arith.constant 0 : index
    %c0_156 = arith.constant 0 : index
    %270 = vector.load %arg10[%c0_153, %c0_154, %c0_155, %c0_156] : memref<1x8x4x32xf32, #tpu.memory_space<vmem>>, vector<1x8x1x32xf32>
    %271 = vector.shape_cast %270 : vector<1x8x1x32xf32> to vector<8x32xf32>
    %272 = vector.shape_cast %269 : vector<8x32xf32> to vector<1x8x1x32xf32>
    tpu.vector_store %arg10[%c0_153, %c0_154, %c0_155, %c0_156], %272 {strides = array<i32>} : memref<1x8x4x32xf32, #tpu.memory_space<vmem>>, vector<1x8x1x32xf32>,
    %273 = vector.extract_strided_slice %250 {offsets = [8, 0], sizes = [8, 32], strides = [1, 1]} : vector<32x32xf32> to vector<8x32xf32>
    %274 = vector.broadcast %251 : vector<1x32xf32> to vector<8x32xf32>
    %275 = arith.mulf %273, %274 : vector<8x32xf32>
    %cst_157 = arith.constant dense<0.000000e+00> : vector<8xf32>
    %276 = vector.multi_reduction <add>, %275, %cst_157 [1] : vector<8x32xf32> to vector<8xf32>
    %277 = vector.shape_cast %276 : vector<8xf32> to vector<8x1xf32>
    %278 = vector.broadcast %252 : vector<1x1xf32> to vector<8x1xf32>
    %279 = arith.addf %277, %278 : vector<8x1xf32>
    %280 = arith.negf %279 : vector<8x1xf32>
    %281 = math.exp %280 : vector<8x1xf32>
    %cst_158 = arith.constant 1.000000e+00 : f32
    %282 = vector.broadcast %cst_158 : f32 to vector<8x1xf32>
    %283 = arith.addf %282, %281 : vector<8x1xf32>
    %284 = arith.divf %282, %283 : vector<8x1xf32>
    %285 = vector.broadcast %284 : vector<8x1xf32> to vector<8x32xf32>
    %286 = arith.mulf %285, %273 : vector<8x32xf32>
    %c0_159 = arith.constant 0 : index
    %c0_160 = arith.constant 0 : index
    %c1_161 = arith.constant 1 : index
    %c0_162 = arith.constant 0 : index
    %287 = vector.load %arg1[%c0_159, %c0_160, %c1_161, %c0_162] : memref<1x8x4x32xf32, #tpu.memory_space<vmem>>, vector<1x8x1x32xf32>
    %288 = vector.shape_cast %287 : vector<1x8x1x32xf32> to vector<8x32xf32>
    %289 = arith.addf %288, %286 : vector<8x32xf32>
    %c0_163 = arith.constant 0 : index
    %c0_164 = arith.constant 0 : index
    %c1_165 = arith.constant 1 : index
    %c0_166 = arith.constant 0 : index
    %290 = vector.load %arg10[%c0_163, %c0_164, %c1_165, %c0_166] : memref<1x8x4x32xf32, #tpu.memory_space<vmem>>, vector<1x8x1x32xf32>
    %291 = vector.shape_cast %290 : vector<1x8x1x32xf32> to vector<8x32xf32>
    %292 = vector.shape_cast %289 : vector<8x32xf32> to vector<1x8x1x32xf32>
    tpu.vector_store %arg10[%c0_163, %c0_164, %c1_165, %c0_166], %292 {strides = array<i32>} : memref<1x8x4x32xf32, #tpu.memory_space<vmem>>, vector<1x8x1x32xf32>,
    %293 = vector.extract_strided_slice %250 {offsets = [16, 0], sizes = [8, 32], strides = [1, 1]} : vector<32x32xf32> to vector<8x32xf32>
    %294 = vector.broadcast %251 : vector<1x32xf32> to vector<8x32xf32>
    %295 = arith.mulf %293, %294 : vector<8x32xf32>
    %cst_167 = arith.constant dense<0.000000e+00> : vector<8xf32>
    %296 = vector.multi_reduction <add>, %295, %cst_167 [1] : vector<8x32xf32> to vector<8xf32>
    %297 = vector.shape_cast %296 : vector<8xf32> to vector<8x1xf32>
    %298 = vector.broadcast %252 : vector<1x1xf32> to vector<8x1xf32>
    %299 = arith.addf %297, %298 : vector<8x1xf32>
    %300 = arith.negf %299 : vector<8x1xf32>
    %301 = math.exp %300 : vector<8x1xf32>
    %cst_168 = arith.constant 1.000000e+00 : f32
    %302 = vector.broadcast %cst_168 : f32 to vector<8x1xf32>
    %303 = arith.addf %302, %301 : vector<8x1xf32>
    %304 = arith.divf %302, %303 : vector<8x1xf32>
    %305 = vector.broadcast %304 : vector<8x1xf32> to vector<8x32xf32>
    %306 = arith.mulf %305, %293 : vector<8x32xf32>
    %c0_169 = arith.constant 0 : index
    %c0_170 = arith.constant 0 : index
    %c2_171 = arith.constant 2 : index
    %c0_172 = arith.constant 0 : index
    %307 = vector.load %arg1[%c0_169, %c0_170, %c2_171, %c0_172] : memref<1x8x4x32xf32, #tpu.memory_space<vmem>>, vector<1x8x1x32xf32>
    %308 = vector.shape_cast %307 : vector<1x8x1x32xf32> to vector<8x32xf32>
    %309 = arith.addf %308, %306 : vector<8x32xf32>
    %c0_173 = arith.constant 0 : index
    %c0_174 = arith.constant 0 : index
    %c2_175 = arith.constant 2 : index
    %c0_176 = arith.constant 0 : index
    %310 = vector.load %arg10[%c0_173, %c0_174, %c2_175, %c0_176] : memref<1x8x4x32xf32, #tpu.memory_space<vmem>>, vector<1x8x1x32xf32>
    %311 = vector.shape_cast %310 : vector<1x8x1x32xf32> to vector<8x32xf32>
    %312 = vector.shape_cast %309 : vector<8x32xf32> to vector<1x8x1x32xf32>
    tpu.vector_store %arg10[%c0_173, %c0_174, %c2_175, %c0_176], %312 {strides = array<i32>} : memref<1x8x4x32xf32, #tpu.memory_space<vmem>>, vector<1x8x1x32xf32>,
    %313 = vector.extract_strided_slice %250 {offsets = [24, 0], sizes = [8, 32], strides = [1, 1]} : vector<32x32xf32> to vector<8x32xf32>
    %314 = vector.broadcast %251 : vector<1x32xf32> to vector<8x32xf32>
    %315 = arith.mulf %313, %314 : vector<8x32xf32>
    %cst_177 = arith.constant dense<0.000000e+00> : vector<8xf32>
    %316 = vector.multi_reduction <add>, %315, %cst_177 [1] : vector<8x32xf32> to vector<8xf32>
    %317 = vector.shape_cast %316 : vector<8xf32> to vector<8x1xf32>
    %318 = vector.broadcast %252 : vector<1x1xf32> to vector<8x1xf32>
    %319 = arith.addf %317, %318 : vector<8x1xf32>
    %320 = arith.negf %319 : vector<8x1xf32>
    %321 = math.exp %320 : vector<8x1xf32>
    %cst_178 = arith.constant 1.000000e+00 : f32
    %322 = vector.broadcast %cst_178 : f32 to vector<8x1xf32>
    %323 = arith.addf %322, %321 : vector<8x1xf32>
    %324 = arith.divf %322, %323 : vector<8x1xf32>
    %325 = vector.broadcast %324 : vector<8x1xf32> to vector<8x32xf32>
    %326 = arith.mulf %325, %313 : vector<8x32xf32>
    %c0_179 = arith.constant 0 : index
    %c0_180 = arith.constant 0 : index
    %c3_181 = arith.constant 3 : index
    %c0_182 = arith.constant 0 : index
    %327 = vector.load %arg1[%c0_179, %c0_180, %c3_181, %c0_182] : memref<1x8x4x32xf32, #tpu.memory_space<vmem>>, vector<1x8x1x32xf32>
    %328 = vector.shape_cast %327 : vector<1x8x1x32xf32> to vector<8x32xf32>
    %329 = arith.addf %328, %326 : vector<8x32xf32>
    %c0_183 = arith.constant 0 : index
    %c0_184 = arith.constant 0 : index
    %c3_185 = arith.constant 3 : index
    %c0_186 = arith.constant 0 : index
    %330 = vector.load %arg10[%c0_183, %c0_184, %c3_185, %c0_186] : memref<1x8x4x32xf32, #tpu.memory_space<vmem>>, vector<1x8x1x32xf32>
    %331 = vector.shape_cast %330 : vector<1x8x1x32xf32> to vector<8x32xf32>
    %332 = vector.shape_cast %329 : vector<8x32xf32> to vector<1x8x1x32xf32>
    tpu.vector_store %arg10[%c0_183, %c0_184, %c3_185, %c0_186], %332 {strides = array<i32>} : memref<1x8x4x32xf32, #tpu.memory_space<vmem>>, vector<1x8x1x32xf32>,
    return
  }
  func.func @transform_0(%arg0: i32) -> (i32, i32, i32, i32) {
    %c0_i32 = arith.constant 0 : i32
    %c0_i32_0 = arith.constant 0 : i32
    %c0_i32_1 = arith.constant 0 : i32
    %c0_i32_2 = arith.constant 0 : i32
    return %arg0, %c0_i32, %c0_i32_0, %c0_i32_1 : i32, i32, i32, i32
  }
  func.func @transform_1(%arg0: i32) -> (i32, i32) {
    %c0_i32 = arith.constant 0 : i32
    %c0_i32_0 = arith.constant 0 : i32
    %c0_i32_1 = arith.constant 0 : i32
    return %c0_i32, %c0_i32_0 : i32, i32
  }
  func.func @transform_2(%arg0: i32) -> (i32, i32) {
    %c0_i32 = arith.constant 0 : i32
    %c0_i32_0 = arith.constant 0 : i32
    %c0_i32_1 = arith.constant 0 : i32
    return %c0_i32, %c0_i32_0 : i32, i32
  }
  func.func @transform_3(%arg0: i32) -> (i32, i32) {
    %c0_i32 = arith.constant 0 : i32
    %c0_i32_0 = arith.constant 0 : i32
    %c0_i32_1 = arith.constant 0 : i32
    return %c0_i32, %c0_i32_0 : i32, i32
  }
  func.func @transform_4(%arg0: i32) -> (i32, i32) {
    %c0_i32 = arith.constant 0 : i32
    %c0_i32_0 = arith.constant 0 : i32
    %c0_i32_1 = arith.constant 0 : i32
    return %c0_i32, %c0_i32_0 : i32, i32
  }
  func.func @transform_5(%arg0: i32) -> (i32, i32) {
    %c0_i32 = arith.constant 0 : i32
    %c0_i32_0 = arith.constant 0 : i32
    %c0_i32_1 = arith.constant 0 : i32
    return %c0_i32, %c0_i32_0 : i32, i32
  }
  func.func @transform_6(%arg0: i32) -> (i32, i32) {
    %c0_i32 = arith.constant 0 : i32
    %c0_i32_0 = arith.constant 0 : i32
    %c0_i32_1 = arith.constant 0 : i32
    return %c0_i32, %c0_i32_0 : i32, i32
  }
  func.func @transform_7(%arg0: i32) -> (i32, i32) {
    %c0_i32 = arith.constant 0 : i32
    %c0_i32_0 = arith.constant 0 : i32
    %c0_i32_1 = arith.constant 0 : i32
    return %c0_i32, %c0_i32_0 : i32, i32
  }
  func.func @transform_8(%arg0: i32) -> (i32, i32) {
    %c0_i32 = arith.constant 0 : i32
    %c0_i32_0 = arith.constant 0 : i32
    %c0_i32_1 = arith.constant 0 : i32
    return %c0_i32, %c0_i32_0 : i32, i32
  }
  func.func @transform_9(%arg0: i32) -> (i32, i32, i32, i32) {
    %c0_i32 = arith.constant 0 : i32
    %c0_i32_0 = arith.constant 0 : i32
    %c0_i32_1 = arith.constant 0 : i32
    %c0_i32_2 = arith.constant 0 : i32
    return %arg0, %c0_i32, %c0_i32_0, %c0_i32_1 : i32, i32, i32, i32
  }
}

</mosaic_0001>

<bundles_post_ra>
// kernel: tpu_custom_call.1
= control target key start
LH: loop header
LB: loop body
LE: loop exit
PB: predicated region body
PF: predicated region fallthrough
CT: control target
= control target key end

     0   :  { %s4235_s0 = inlined_call_operand.hbm [shape: f32[2,8,4,32], index: 0, kind: input, shape index: {}]   ;;  %s4236_s1 = inlined_call_operand.vmem [shape: f32[1,32], index: 1, kind: input, shape index: {}]   ;;  %s4237_s2 = inlined_call_operand.vmem [shape: f32[1,32], index: 2, kind: input, shape index: {}]   ;;  %s4238_s3 = inlined_call_operand.hbm [shape: bf16[32,64], index: 3, kind: input, shape index: {}]   ;;  %s4239_s4 = inlined_call_operand.hbm [shape: bf16[32,32], index: 4, kind: input, shape index: {}]   ;;  %s4240_s5 = inlined_call_operand.hbm [shape: bf16[32,32], index: 5, kind: input, shape index: {}]   ;;  %s4241_s6 = inlined_call_operand.vmem [shape: f32[1,32], index: 6, kind: input, shape index: {}]   ;;  %s4242_s7 = inlined_call_operand.vmem [shape: f32[1,32], index: 7, kind: input, shape index: {}]   ;;  %s4243_s8 = inlined_call_operand.<no memory space> [shape: f32[1,1], index: 8, kind: input, shape index: {}]   ;;  %s4244_s9 = inlined_call_operand.hbm [shape: f32[2,8,4,32], index: 9, kind: output, shape index: {}]  }
   0x1   :  { %4251 = sst [smem:[#allocation19_spill]] %s4238_s3  ;;  %v14_v0 = vstv %s4243_s8 }
   0x2   :  { %4252 = sst [smem:[#allocation20_spill]] %s4239_s4  ;;  %15 = vst [vmem:[#allocation5] sm:$0x1] %v14_v0 }
   0x3   :  { %16 = vsyncpa [#allocation7], 0 }
   0x4   :  { %18 = vsyncpa [#allocation7 + $0x1], 0 }
   0x5   :  { %19 = vsyncpa [#allocation10], 0 }
   0x6   :  { %20 = vsyncpa [#allocation13], 0 }
   0x7   :  { %21 = vsyncpa [#allocation8], 0 }
   0x8   :  { %23 = vsyncpa [#allocation8 + $0x1], 0  ;;  %s3158_s11 = smov 0   ;;  %s3160_s12 = smov 0  }
   0x9   :  { %s3162_s13 = smov 0   ;;  %s3164_s14 = smov 0  }
   0xa LB: > { %s3179_s8 = sadd.s32 4294967295, %s3081_s14   ;;  %s2500_s15 = sadd.s32 4294967294, %s3081_s14   ;;  %s3081_s14 = sphi %s3164_s14, %s4275_s14   ;;  %s3077_s13 = sphi %s3162_s13, %s4274_s13   ;;  %s3073_s12 = sphi %s3160_s12, %s4273_s12   ;;  %s3069_s11 = sphi %s3158_s11, %s4272_s11  }
   0xb   : > { %p49_p0 = scmp.ne.s32.totalorder %s3073_s12, %s3069_s11  ;;  %p4245_p1 = scmp.eq.s32.totalorder %s3179_s8, 0 }
   0xc   : > { %p241_p2 = scmp.eq.s32.totalorder %s3179_s8, 1  ;;  %p247_p3 = scmp.eq.s32.totalorder %s2500_s15, 1 }
   0xd   : > { %p3188_p4 = por %p4245_p1, %p49_p0  ;;  %p2501_p5 = scmp.ge.s32.totalorder %s3081_s14, 1 }
   0xe   : > { %p3193_p6 = por %p247_p3, %p49_p0  ;;  %p254_p7 = scmp.lt.s32.totalorder %s3081_s14, 3 }
   0xf   : > { %s4253_s16 = scalar_select %p3188_p4, 1, 0 }
  0x10   : > { %s4254_s17 = scalar_select %p3193_p6, 1, 0 }
  0x11   : > { %p3198_p8 = pnand %p2501_p5, %p254_p7  ;;  %s3083_s19 = smov [#allocation9]  }
  0x12   : > { %s272_s20 = sshll.u32 %s3083_s19, 4  ;;  %s3084_s22 = smov [#allocation11]   ;;  %s273_s20 = int_to_ptr.vmem [resolvable:$true] %s272_s20 }
  0x13   : > { %s4255_s18 = scalar_select %p3198_p8, 1, 0 }
  0x14   : > { %p2761_p9 = pneg %p3198_p8  ;;  %s285_s23 = sshll.u32 %s3084_s22, 4  ;;  %s286_s23 = int_to_ptr.vmem [resolvable:$true] %s285_s23 }
  0x15   : > { %s3085_s24 = smov [#allocation12]   ;;  %s2914_s26 = scalar_lea.vmem %s273_s20, 256 }
  0x16   : > { %p3207_p11 = pnand %p2761_p9, %p4245_p1  ;;  %s298_s25 = sshll.u32 %s3085_s24, 4  ;;  %s299_s25 = int_to_ptr.vmem [resolvable:$true] %s298_s25 }
  0x17   : > { %p2915_p13 = scmp.ne.s32.totalorder %s273_s20, %s2914_s26  ;;  %p2922_p5 = scmp.lt.s32.totalorder %s273_s20, %s273_s20 }
  0x18   : > { %p2905_p12 = pneg %p3207_p11  ;;  %p2923_p7 = scmp.lt.s32.totalorder %s2914_s26, %s2914_s26 }
  0x1a   : > { %p2917_p0 = pnand %p2915_p13, %p2905_p12  ;;  %p2924_p9 = por %p2923_p7, %p2922_p5 }
  0x1c   : > { %p2918_p3 = pneg %p2917_p0 }
  0x1e   : > { %p2925_p10 = pnand %p2924_p9, %p2918_p3 }
  0x20   : > { %2928 = shalt.err (!%p2925_p10)
}
  0x21   : > { %s4246_s27 = smov 64   ;;  %s4247_s28 = smov 4  }
  0x22   : > { %s4257_s3 = sld [smem:[#allocation19_spill]]  ;;  %s2940_s10 = scalar_lea.vmem %s286_s23, 256 }
  0x23   : > { %p2941_p13 = scmp.ne.s32.totalorder %s286_s23, %s2940_s10  ;;  %p2948_p3 = scmp.lt.s32.totalorder %s286_s23, %s286_s23 }
  0x24   : > { %p2949_p10 = scmp.lt.s32.totalorder %s2940_s10, %s2940_s10 }
  0x25   : > { %p2943_p0 = pnand %p2941_p13, %p2905_p12 }
  0x26   : > { %p2950_p7 = por %p2949_p10, %p2948_p3 }
  0x27   : > { %p2944_p5 = pneg %p2943_p0 }
  0x28   : > { %2764 = dma.hbm_to_vmem [thread:$0]  (!%p3207_p11), %s4257_s3, 256, %s273_s20, [#allocation10], %s4246_s27, %s4246_s27, %s4247_s28  }
  0x29   : > { %p2951_p9 = pnand %p2950_p7, %p2944_p5 }
  0x2b   : > { %2954 = shalt.err (!%p2951_p9)
}
  0x2c   : > { %s4258_s4 = sld [smem:[#allocation20_spill]]  ;;  %s2966_s20 = scalar_lea.vmem %s299_s25, 256 }
  0x2d   : > { %p2967_p1 = scmp.ne.s32.totalorder %s299_s25, %s2966_s20  ;;  %p2974_p3 = scmp.lt.s32.totalorder %s299_s25, %s299_s25 }
  0x2e   : > { %p2975_p5 = scmp.lt.s32.totalorder %s2966_s20, %s2966_s20 }
  0x2f   : > { %p2969_p13 = pnand %p2967_p1, %p2905_p12 }
  0x30   : > { %p2976_p10 = por %p2975_p5, %p2974_p3 }
  0x31   : > { %p2970_p0 = pneg %p2969_p13 }
  0x32   : > { %2767 = dma.hbm_to_vmem [thread:$0]  (!%p3207_p11), %s4258_s4, 256, %s286_s23, [#allocation10], %s4246_s27, %s4246_s27, %s4247_s28  }
  0x33   : > { %p2977_p7 = pnand %p2976_p10, %p2970_p0 }
  0x35   : > { %2980 = shalt.err (!%p2977_p7)
}
  0x36   : > { %2770 = dma.hbm_to_vmem [thread:$0]  (!%p3207_p11), %s4240_s5, 256, %s299_s25, [#allocation13], %s4246_s27, %s4246_s27, %s4247_s28  }
  0x37   : > { %s3247_s23 = sadd.s32 1, %s3081_s14   ;;  %s36_s26 = sadd.s32 1, %s3077_s13 }
  0x38   : > { %s33_s21 = ssub.s32 %s3081_s14, %s3247_s23  ;;  %p43_p12 = scmp.ne.s32.totalorder %s3077_s13, %s3073_s12 }
  0x39   : > { %p34_p1 = scmp.eq.s32.totalorder %s33_s21, 0  ;;  %p44_p9 = scmp.eq.s32.totalorder %s3081_s14, 0 }
  0x3a   : > { %p2782_p13 = scmp.lt.s32.totalorder %s3081_s14, 2  ;;  %p3261_p3 = por %p241_p2, %p43_p12 }
  0x3b   : > { %s3257_s29 = scalar_select %p34_p1, %s3077_s13, %s36_s26  }
  0x3c   : > { %p45_p0 = por %p44_p9, %p43_p12  ;;  %s321_s10 = sand.u32 1, %s3077_s13  }
  0x3d   : > { %s4259_s30 = scalar_select %p3261_p3, 1, 0 }
  0x3e   : > { %s2604_s15 = sshll.u32 %s3081_s14, 9  ;;  %s2506_s25 = sshll.u32 %s321_s10, 5 }
  0x3f   : > { %s3270_s22 = scalar_lea.hbm %s4235_s0, %s2604_s15  ;;  %s325_s24 = scalar_lea.vmem [#allocation6], %s2506_s25 }
  0x40   : > { %s332_s21 = sshll.u32 %s325_s24, 4  ;;  %p3272_p11 = pnand %p2782_p13, %p45_p0  ;;  %s3276_s21 = int_to_ptr.vmem [resolvable:$true] %s332_s21 }
  0x41   : > { %s3278_s27 = scalar_lea.sflag [#allocation7], %s321_s10  ;;  %s2981_s28 = scalar_lea.hbm %s3270_s22, 512 }
  0x42   : > { %p2982_p2 = scmp.ne.s32.totalorder %s3270_s22, %s2981_s28  ;;  %p2983_p5 = pneg %p3272_p11 }
  0x43   : > { %s2986_s25 = scalar_lea.hbm %s4235_s0, 1024  ;;  %p2987_p1 = scmp.lt.s32.totalorder %s3270_s22, %s4235_s0 }
  0x44   : > { %p2984_p10 = pnand %p2983_p5, %p2982_p2  ;;  %p2988_p12 = scmp.lt.s32.totalorder %s2986_s25, %s2981_s28 }
  0x46   : > { %p2985_p7 = pneg %p2984_p10  ;;  %p2989_p9 = por %p2988_p12, %p2987_p1 }
  0x48   : > { %p2990_p13 = pnand %p2989_p9, %p2985_p7 }
  0x4a   : > { %2993 = shalt.err (!%p2990_p13)
}
  0x4b   : > { %s2994_s10 = scalar_lea.vmem %s3276_s21, 512  ;;  %s3088_s3 = smov [#allocation6]  }
  0x4c   : > { %p2995_p0 = scmp.ne.s32.totalorder %s3276_s21, %s2994_s10  ;;  %s2999_s4 = sshll.u32 %s3088_s3, 4  ;;  %s3000_s4 = int_to_ptr.vmem [resolvable:$false] %s2999_s4 }
  0x4d   : > { %s3001_s15 = scalar_lea.vmem %s3000_s4, 1024  ;;  %p3002_p10 = scmp.lt.s32.totalorder %s3276_s21, %s3000_s4 }
  0x4e   : > { %p2997_p6 = pnand %p2995_p0, %p2983_p5  ;;  %p3003_p3 = scmp.lt.s32.totalorder %s3001_s15, %s2994_s10 }
  0x50   : > { %p2998_p2 = pneg %p2997_p6  ;;  %p3004_p4 = por %p3003_p3, %p3002_p10 }
  0x52   : > { %p3005_p8 = pnand %p3004_p4, %p2998_p2 }
  0x54   : > { %3008 = shalt.err (!%p3005_p8)
}
  0x55   : > { %s4261_s28 = smov 4   ;;  %s4262_s19 = smov 64  }
  0x56   : > { %2774 = dma.hbm_to_vmem [thread:$0]  (!%p3272_p11), %s3270_s22, 512, %s3276_s21, %s3278_s27, %s4262_s19, %s4262_s19, %s4261_s28  }
  0x57   : > { %p4263_p6 = scmp.ne.s32.totalorder %s4255_s18, 0 }
  0x58   : > { %s3305_s3 = sand.u32 (!%p4263_p6), 1, %s3073_s12   ;;  %p4264_p4 = scmp.ne.s32.totalorder (!%p4263_p6), %s4253_s16, 0 }
  0x59   : > { %344 = sbr.rel (%p4263_p6) target bundleno = 2216 (0x8a8), region = 56  ;;  %s2510_s4 = sshll.u32 (!%p4263_p6), %s3305_s3, 5 }
  0x5a   : > { %s347_s25 = scalar_lea.sflag (!%p4263_p6), [#allocation7], %s3305_s3  ;;  %s3311_s26 = scalar_lea.vmem (!%p4263_p6), [#allocation6], %s2510_s4 }
  0x5e   : > { %3052 = dma.done.wait (%p4264_p4), %s347_s25, 512  }
  0x5f   : > { %3054 = vsyncadd (%p4264_p4), %s347_s25, 4294966784  ;;  %p4265_p8 = scmp.eq.s32.totalorder %s3179_s8, 0 }
  0x61   : > { %3056 = dma.done.wait (%p4265_p8), [#allocation10], 512   ;;  %p4266_p3 = pmov %p4265_p8 }
  0x63   : > { %3058 = vsyncadd (%p4266_p3), [#allocation10], 4294966784  ;;  %p4267_p11 = pmov %p4266_p3 }
  0x64   : > { %p4268_p5 = pmov %p4266_p3 }
  0x65   : > { %3060 = dma.done.wait (%p4267_p11), [#allocation13], 256  }
  0x66   : > { %3062 = vsyncadd (%p4268_p5), [#allocation13], 4294967040  ;;  %vm417_vm0 = vcmask 1041409   ;;  %vm420_vm1 = vcmask 1042434   ;;  %vm423_vm2 = vcmask 1043459   ;;  %vm426_vm3 = vcmask 1044484  }
  0x67   : > { %vm429_vm4 = vcmask 1045509   ;;  %vm432_vm5 = vcmask 1046534   ;;  %vm435_vm6 = vcmask 1047559   ;;  %v3326_v1 = vld [vmem:[%s3311_s26 + $0x2] sm:$0x1]  ;;  %vm438_vm7 = vcmask 261120  }
  0x68   : > { %v3329_v2 = vld [vmem:[%s3311_s26 + $0x6] sm:$0x1]  ;;  %v3332_v3 = vld [vmem:[%s3311_s26 + $0xa] sm:$0x1]  ;;  %v3335_v4 = vld [vmem:[%s3311_s26 + $0xe] sm:$0x1] }
  0x69   : > { %v3338_v5 = vld [vmem:[%s3311_s26 + $0x12] sm:$0x1]  ;;  %v3341_v6 = vld [vmem:[%s3311_s26 + $0x16] sm:$0x1]  ;;  %v3344_v7 = vld [vmem:[%s3311_s26 + $0x1a] sm:$0x1] }
  0x6a   : > { %v3347_v8 = vld [vmem:[%s3311_s26 + $0x1e] sm:$0x1]  ;;  %v840_v9 = vrot.slane %v3329_v2, 7  ;;  %v842_v10 = vrot.slane %v3332_v3, 6  ;;  %v844_v11 = vrot.slane %v3335_v4, 5  ;;  %v846_v12 = vrot.slane %v3338_v5, 4 }
  0x6b   : > { %v848_v13 = vrot.slane %v3341_v6, 3  ;;  %v3355_v14 = vld [vmem:[%s3311_s26] sm:$0x1]  ;;  %v850_v16 = vrot.slane %v3344_v7, 2  ;;  %v852_v17 = vrot.slane %v3347_v8, 1  ;;  %vm3090_vm8 = vmmov 0  }
  0x6c   : > { %v841_v15 = vsel %vm417_vm0, %v840_v9, %v3326_v1  ;;  %v3362_v18 = vld [vmem:[%s3311_s26 + $0x4] sm:$0x1]  ;;  %v3365_v19 = vld [vmem:[%s3311_s26 + $0x8] sm:$0x1]  ;;  %v3369_v21 = vld [vmem:[%s3311_s26 + $0xc] sm:$0x1] }
  0x6d   : > { %v843_v20 = vsel %vm420_vm1, %v842_v10, %v841_v15  ;;  %v3372_v22 = vld [vmem:[%s3311_s26 + $0x10] sm:$0x1]  ;;  %v3375_v23 = vld [vmem:[%s3311_s26 + $0x14] sm:$0x1]  ;;  %v3379_v25 = vld [vmem:[%s3311_s26 + $0x18] sm:$0x1] }
  0x6e   : > { %v845_v24 = vsel %vm423_vm2, %v844_v11, %v843_v20  ;;  %v3382_v26 = vld [vmem:[%s3311_s26 + $0x1c] sm:$0x1]  ;;  %v416_v27 = vrot.slane %v3362_v18, 7  ;;  %v419_v28 = vrot.slane %v3365_v19, 6  ;;  %v422_v30 = vrot.slane %v3369_v21, 5  ;;  %s3091_s21 = smov 88  }
  0x6f   : > { %v847_v29 = vsel %vm426_vm3, %v846_v12, %v845_v24  ;;  %v425_v31 = vrot.slane %v3372_v22, 4  ;;  %v428_v32 = vrot.slane %v3375_v23, 3  ;;  %v3391_v33 = vld [vmem:[%s3311_s26 + $0x3] sm:$0x1]  ;;  %v431_v36 = vrot.slane %v3379_v25, 2  ;;  %s3092_s20 = smov 96  }
  0x70   : > { %v849_v34 = vsel %vm429_vm4, %v848_v13, %v847_v29  ;;  %v418_v35 = vsel %vm417_vm0, %v416_v27, %v3355_v14  ;;  %v434_v37 = vrot.slane %v3382_v26, 1  ;;  %v3399_v38 = vld [vmem:[%s3311_s26 + $0x7] sm:$0x1]  ;;  %v3402_v39 = vld [vmem:[%s3311_s26 + $0xb] sm:$0x1]  ;;  %vm621_vm9 = vcmask 257024  }
  0x71   : > { %v851_v40 = vsel %vm432_vm5, %v850_v16, %v849_v34  ;;  %v421_v41 = vsel %vm420_vm1, %v419_v28, %v418_v35  ;;  %v3407_v42 = vld [vmem:[%s3311_s26 + $0xf] sm:$0x1]  ;;  %v3410_v43 = vld [vmem:[%s3311_s26 + $0x13] sm:$0x1]  ;;  %v3413_v44 = vld [vmem:[%s3311_s26 + $0x17] sm:$0x1] }
  0x72   : > { %v853_v45 = vsel %vm435_vm6, %v852_v17, %v851_v40  ;;  %v424_v46 = vsel %vm423_vm2, %v422_v30, %v421_v41  ;;  %v3418_v47 = vld [vmem:[%s3311_s26 + $0x1b] sm:$0x1]  ;;  %v3421_v48 = vld [vmem:[%s3311_s26 + $0x1f] sm:$0x1]  ;;  %v1041_v49 = vrot.slane %v3399_v38, 7  ;;  %v1043_v50 = vrot.slane %v3402_v39, 6 }
  0x73   : > { %v855_v51 = vsel %vm438_vm7, %v853_v45, 0.0  ;;  %v427_v52 = vsel %vm426_vm3, %v425_v31, %v424_v46  ;;  %v1045_v53 = vrot.slane %v3407_v42, 5  ;;  %v1047_v54 = vrot.slane %v3410_v43, 4  ;;  %v3430_v55 = vld [vmem:[%s3311_s26 + $0x1] sm:$0x1]  ;;  %s3093_s24 = smov 80  }
  0x74   : > { %856 = vadd.xlane.f32.xlu1 %v855_v51  ;;  %v430_v56 = vsel %vm429_vm4, %v428_v32, %v427_v52  ;;  %v1042_v57 = vsel %vm417_vm0, %v1041_v49, %v3391_v33  ;;  %v1049_v58 = vrot.slane %v3413_v44, 3  ;;  %v1051_v59 = vrot.slane %v3418_v47, 2  ;;  %v3438_v60 = vld [vmem:[%s3311_s26 + $0x5] sm:$0x1]  ;;  %v3441_v61 = vld [vmem:[%s3311_s26 + $0x9] sm:$0x1] }
  0x75   : > { %v433_v62 = vsel %vm432_vm5, %v431_v36, %v430_v56  ;;  %v1044_v63 = vsel %vm420_vm1, %v1043_v50, %v1042_v57  ;;  %v1053_v0 = vrot.slane %v3421_v48, 1  ;;  %v3447_v9 = vld [vmem:[%s3311_s26 + $0xd] sm:$0x1]  ;;  %v3450_v10 = vld [vmem:[%s3311_s26 + $0x11] sm:$0x1]  ;;  %v639_v11 = vrot.slane %v3438_v60, 7 }
  0x76   : > { %v436_v12 = vsel %vm435_vm6, %v434_v37, %v433_v62  ;;  %v1046_v13 = vsel %vm423_vm2, %v1045_v53, %v1044_v63  ;;  %v3456_v15 = vld [vmem:[%s3311_s26 + $0x15] sm:$0x1]  ;;  %v3459_v16 = vld [vmem:[%s3311_s26 + $0x19] sm:$0x1]  ;;  %v3462_v17 = vld [vmem:[%s3311_s26 + $0x1d] sm:$0x1] }
  0x77   : > { %v439_v20 = vsel %vm438_vm7, %v436_v12, 0.0  ;;  %v1048_v24 = vsel %vm426_vm3, %v1047_v54, %v1046_v13  ;;  %v640_v27 = vsel %vm417_vm0, %v639_v11, %v3430_v55  ;;  %v641_v28 = vrot.slane %v3441_v61, 6  ;;  %s3094_s10 = smov 72   ;;  %s3095_s15 = smov 120  }
  0x78   : > { %440 = vadd.xlane.f32.xlu0 %v439_v20  ;;  %v1050_v29 = vsel %vm429_vm4, %v1049_v58, %v1048_v24  ;;  %v643_v30 = vrot.slane %v3447_v9, 5  ;;  %v645_v31 = vrot.slane %v3450_v10, 4  ;;  %v647_v32 = vrot.slane %v3456_v15, 3  ;;  %s3096_s28 = smov 104   ;;  %s3097_s19 = smov 112  }
  0x79   : > { %v1052_v34 = vsel %vm432_vm5, %v1051_v59, %v1050_v29  ;;  %v642_v35 = vsel %vm420_vm1, %v641_v28, %v640_v27  ;;  %v649_v36 = vrot.slane %v3459_v16, 2  ;;  %v651_v37 = vrot.slane %v3462_v17, 1  ;;  %s3098_s25 = smov 8   ;;  %s3099_s16 = smov 16  }
  0x7a   : > { %v1054_v40 = vsel %vm435_vm6, %v1053_v0, %v1052_v34  ;;  %v644_v41 = vsel %vm423_vm2, %v643_v30, %v642_v35  ;;  %vm1336_vm10 = vcmask 64512   ;;  %s3100_s18 = smov 24   ;;  %vm1712_vm11 = vcmask 130048   ;;  %p4269_p1 = scmp.ne.s32.totalorder %s4259_s30, 0 }
  0x7b   : > { %v1056_v45 = vsel %vm438_vm7, %v1054_v40, 0.0  ;;  %v646_v46 = vsel %vm426_vm3, %v645_v31, %v644_v41  ;;  %vm1715_vm12 = vcmask 195584   ;;  %vm1721_vm13 = vcmask 1043456  }
  0x7c   : > { %1057 = vadd.xlane.f32.xlu1 %v1056_v45  ;;  %v648_v49 = vsel %vm429_vm4, %v647_v32, %v646_v46  ;;  %vm1765_vm14 = vcmask 60416   ;;  %vm1860_vm15 = vcmask 126016  }
  0x7d   : > { %v650_v50 = vsel %vm432_vm5, %v649_v36, %v648_v49 }
  0x7e   : > { %v652_v51 = vsel %vm435_vm6, %v651_v37, %v650_v50 }
  0x7f   : > { %v654_v52 = vsel %vm438_vm7, %v652_v51, 0.0 }
  0x80   : > { %655 = vadd.xlane.f32.xlu0 %v654_v52 }
  0xfd   : > { %v857_v53 = vpop.xlane.xlu1 %856 }
  0xfe   : > { %v858_v54 = vmul.f32 0.03125, %v857_v53 }
 0x100   : > { %v860_v56 = vrot.slane %v858_v54, 1  ;;  %v861_v57 = vrot.slane %v858_v54, 2  ;;  %v862_v58 = vrot.slane %v858_v54, 3  ;;  %v863_v59 = vrot.slane %v858_v54, 4 }
 0x101   : > { %v441_v62 = vpop.xlane.xlu0 %440  ;;  %v864_v63 = vrot.slane %v858_v54, 5  ;;  %v865_v0 = vrot.slane %v858_v54, 6  ;;  %v866_v11 = vrot.slane %v858_v54, 7  ;;  %v3486_v12 = vsub.f32 %v3326_v1, %v858_v54 }
 0x102   : > { %v443_v13 = vmul.f32 0.03125, %v441_v62  ;;  %v3489_v20 = vsub.f32 %v3329_v2, %v860_v56  ;;  %v3492_v24 = vsub.f32 %v3332_v3, %v861_v57  ;;  %v3495_v27 = vsub.f32 %v3335_v4, %v862_v58 }
 0x103   : > { %v3498_v28 = vsub.f32 %v3338_v5, %v863_v59  ;;  %v3501_v29 = vsub.f32 %v3341_v6, %v864_v63  ;;  %v3504_v30 = vsub.f32 %v3344_v7, %v865_v0  ;;  %v3507_v1 = vsub.f32 %v3347_v8, %v866_v11 }
 0x104   : > { %v445_v2 = vrot.slane %v443_v13, 1  ;;  %v446_v31 = vrot.slane %v443_v13, 2  ;;  %v447_v32 = vrot.slane %v443_v13, 3  ;;  %v448_v3 = vrot.slane %v443_v13, 4 }
 0x105   : > { %v1058_v34 = vpop.xlane.xlu1 %1057  ;;  %v449_v35 = vrot.slane %v443_v13, 5  ;;  %v450_v4 = vrot.slane %v443_v13, 6  ;;  %v451_v36 = vrot.slane %v443_v13, 7  ;;  %v3510_v5 = vsub.f32 %v3355_v14, %v443_v13 }
 0x106   : > { %v3512_v37 = vmul.f32 0.03125, %v1058_v34  ;;  %v3515_v6 = vsub.f32 %v3362_v18, %v445_v2  ;;  %v3518_v7 = vsub.f32 %v3365_v19, %v446_v31  ;;  %v3521_v8 = vsub.f32 %v3369_v21, %v447_v32 }
 0x107   : > { %v3524_v40 = vsub.f32 %v3372_v22, %v448_v3  ;;  %v3527_v41 = vsub.f32 %v3375_v23, %v449_v35  ;;  %v3530_v14 = vsub.f32 %v3379_v25, %v450_v4  ;;  %v3533_v45 = vsub.f32 %v3382_v26, %v451_v36 }
 0x108   : > { %v468_v18 = vmul.f32 %v3510_v5, %v3510_v5  ;;  %v469_v19 = vmul.f32 %v3515_v6, %v3515_v6  ;;  %v470_v21 = vmul.f32 %v3518_v7, %v3518_v7  ;;  %v471_v22 = vmul.f32 %v3521_v8, %v3521_v8 }
 0x109   : > { %v656_v23 = vpop.xlane.xlu0 %655  ;;  %v472_v25 = vmul.f32 %v3524_v40, %v3524_v40  ;;  %v473_v26 = vmul.f32 %v3527_v41, %v3527_v41  ;;  %v474_v46 = vmul.f32 %v3530_v14, %v3530_v14  ;;  %v475_v49 = vmul.f32 %v3533_v45, %v3533_v45 }
 0x10a   : > { %v657_v50 = vmul.f32 0.03125, %v656_v23  ;;  %v484_v51 = vrot.slane %v469_v19, 7  ;;  %v486_v52 = vrot.slane %v470_v21, 6  ;;  %v488_v53 = vrot.slane %v471_v22, 5 }
 0x10b   : > { %v490_v54 = vrot.slane %v472_v25, 4  ;;  %v492_v56 = vrot.slane %v473_v26, 3  ;;  %v494_v57 = vrot.slane %v474_v46, 2  ;;  %v496_v58 = vrot.slane %v475_v49, 1 }
 0x10c   : > { %v485_v59 = vsel %vm417_vm0, %v484_v51, %v468_v18  ;;  %v883_v62 = vmul.f32 %v3486_v12, %v3486_v12  ;;  %v884_v63 = vmul.f32 %v3489_v20, %v3489_v20  ;;  %v885_v0 = vmul.f32 %v3492_v24, %v3492_v24 }
 0x10d   : > { %v487_v11 = vsel %vm420_vm1, %v486_v52, %v485_v59  ;;  %v886_v13 = vmul.f32 %v3495_v27, %v3495_v27  ;;  %v887_v2 = vmul.f32 %v3498_v28, %v3498_v28  ;;  %v888_v31 = vmul.f32 %v3501_v29, %v3501_v29 }
 0x10e   : > { %v489_v32 = vsel %vm423_vm2, %v488_v53, %v487_v11  ;;  %v889_v3 = vmul.f32 %v3504_v30, %v3504_v30  ;;  %v890_v34 = vmul.f32 %v3507_v1, %v3507_v1  ;;  %v899_v35 = vrot.slane %v884_v63, 7 }
 0x10f   : > { %v491_v4 = vsel %vm426_vm3, %v490_v54, %v489_v32  ;;  %v901_v36 = vrot.slane %v885_v0, 6  ;;  %v903_v18 = vrot.slane %v886_v13, 5  ;;  %v905_v19 = vrot.slane %v887_v2, 4 }
 0x110   : > { %v493_v21 = vsel %vm429_vm4, %v492_v56, %v491_v4  ;;  %v900_v22 = vsel %vm417_vm0, %v899_v35, %v883_v62  ;;  %v907_v23 = vrot.slane %v888_v31, 3  ;;  %v909_v25 = vrot.slane %v889_v3, 2 }
 0x111   : > { %v495_v26 = vsel %vm432_vm5, %v494_v57, %v493_v21  ;;  %v902_v46 = vsel %vm420_vm1, %v901_v36, %v900_v22  ;;  %v911_v49 = vrot.slane %v890_v34, 1  ;;  %v659_v51 = vrot.slane %v657_v50, 1 }
 0x112   : > { %v497_v52 = vsel %vm435_vm6, %v496_v58, %v495_v26  ;;  %v904_v53 = vsel %vm423_vm2, %v903_v18, %v902_v46  ;;  %v660_v54 = vrot.slane %v657_v50, 2  ;;  %v661_v59 = vrot.slane %v657_v50, 3 }
 0x113   : > { %v499_v63 = vsel %vm438_vm7, %v497_v52, 0.0  ;;  %v906_v56 = vsel %vm426_vm3, %v905_v19, %v904_v53  ;;  %v662_v0 = vrot.slane %v657_v50, 4  ;;  %v663_v62 = vrot.slane %v657_v50, 5 }
 0x114   : > { %500 = vadd.xlane.f32.xlu0 %v499_v63  ;;  %v908_v11 = vsel %vm429_vm4, %v907_v23, %v906_v56  ;;  %v664_v57 = vrot.slane %v657_v50, 6  ;;  %v665_v13 = vrot.slane %v657_v50, 7  ;;  %v3581_v2 = vsub.f32 %v3430_v55, %v657_v50 }
 0x115   : > { %v910_v58 = vsel %vm432_vm5, %v909_v25, %v908_v11  ;;  %v3585_v31 = vsub.f32 %v3438_v60, %v659_v51  ;;  %v3588_v32 = vsub.f32 %v3441_v61, %v660_v54  ;;  %v3591_v3 = vsub.f32 %v3447_v9, %v661_v59 }
 0x116   : > { %v912_v34 = vsel %vm435_vm6, %v911_v49, %v910_v58  ;;  %v3595_v35 = vsub.f32 %v3450_v10, %v662_v0  ;;  %v3598_v4 = vsub.f32 %v3456_v15, %v663_v62  ;;  %v3601_v55 = vsub.f32 %v3459_v16, %v664_v57 }
 0x117   : > { %v914_v60 = vsel %vm438_vm7, %v912_v34, 0.0  ;;  %v3605_v50 = vsub.f32 %v3462_v17, %v665_v13  ;;  %v682_v61 = vmul.f32 %v3581_v2, %v3581_v2  ;;  %v683_v9 = vmul.f32 %v3585_v31, %v3585_v31 }
 0x118   : > { %915 = vadd.xlane.f32.xlu0 %v914_v60  ;;  %v684_v10 = vmul.f32 %v3588_v32, %v3588_v32  ;;  %v685_v15 = vmul.f32 %v3591_v3, %v3591_v3  ;;  %v686_v16 = vmul.f32 %v3595_v35, %v3595_v35  ;;  %v687_v17 = vmul.f32 %v3598_v4, %v3598_v4 }
 0x119   : > { %v688_v36 = vmul.f32 %v3601_v55, %v3601_v55  ;;  %v689_v18 = vmul.f32 %v3605_v50, %v3605_v50  ;;  %v698_v19 = vrot.slane %v683_v9, 7  ;;  %v1061_v21 = vrot.slane %v3512_v37, 1 }
 0x11a   : > { %v700_v22 = vrot.slane %v684_v10, 6  ;;  %v702_v23 = vrot.slane %v685_v15, 5  ;;  %v704_v25 = vrot.slane %v686_v16, 4  ;;  %v706_v26 = vrot.slane %v687_v17, 3 }
 0x11b   : > { %v699_v46 = vsel %vm417_vm0, %v698_v19, %v682_v61  ;;  %v708_v49 = vrot.slane %v688_v36, 2  ;;  %v710_v51 = vrot.slane %v689_v18, 1  ;;  %v1062_v52 = vrot.slane %v3512_v37, 2 }
 0x11c   : > { %v701_v53 = vsel %vm420_vm1, %v700_v22, %v699_v46  ;;  %v1063_v54 = vrot.slane %v3512_v37, 3  ;;  %v1064_v59 = vrot.slane %v3512_v37, 4  ;;  %v1065_v63 = vrot.slane %v3512_v37, 5 }
 0x11d   : > { %v703_v56 = vsel %vm423_vm2, %v702_v23, %v701_v53  ;;  %v1066_v0 = vrot.slane %v3512_v37, 6  ;;  %v1067_v62 = vrot.slane %v3512_v37, 7  ;;  %v3635_v11 = vsub.f32 %v3391_v33, %v3512_v37 }
 0x11e   : > { %v705_v57 = vsel %vm426_vm3, %v704_v25, %v703_v56  ;;  %v3639_v13 = vsub.f32 %v3399_v38, %v1061_v21  ;;  %v3642_v58 = vsub.f32 %v3402_v39, %v1062_v52  ;;  %v3645_v34 = vsub.f32 %v3407_v42, %v1063_v54 }
 0x11f   : > { %v707_v60 = vsel %vm429_vm4, %v706_v26, %v705_v57  ;;  %v3649_v61 = vsub.f32 %v3410_v43, %v1064_v59  ;;  %v3652_v9 = vsub.f32 %v3413_v44, %v1065_v63  ;;  %v3655_v33 = vsub.f32 %v3418_v47, %v1066_v0  ;;  %v2841_v63 = vld [vmem:[#allocation9 + $0x8] sm:$0xff]   ;;  %v2842_v0 = vld [vmem:[#allocation9] sm:$0xff]  }
 0x120   : > { %v709_v38 = vsel %vm432_vm5, %v708_v49, %v707_v60  ;;  %v3659_v37 = vsub.f32 %v3421_v48, %v1067_v62  ;;  %v1084_v39 = vmul.f32 %v3635_v11, %v3635_v11  ;;  %v1085_v42 = vmul.f32 %v3639_v13, %v3639_v13 }
 0x121   : > { %v711_v43 = vsel %vm435_vm6, %v710_v51, %v709_v38  ;;  %v1086_v44 = vmul.f32 %v3642_v58, %v3642_v58  ;;  %v1087_v47 = vmul.f32 %v3645_v34, %v3645_v34  ;;  %v1088_v10 = vmul.f32 %v3649_v61, %v3649_v61 }
 0x122   : > { %v713_v48 = vsel %vm438_vm7, %v711_v43, 0.0  ;;  %v1089_v15 = vmul.f32 %v3652_v9, %v3652_v9  ;;  %v1090_v16 = vmul.f32 %v3655_v33, %v3655_v33  ;;  %v1100_v17 = vrot.slane %v1085_v42, 7 }
 0x123   : > { %714 = vadd.xlane.f32.xlu1 %v713_v48  ;;  %v1102_v36 = vrot.slane %v1086_v44, 6  ;;  %v1104_v18 = vrot.slane %v1087_v47, 5  ;;  %v1106_v19 = vrot.slane %v1088_v10, 4  ;;  %v1091_v21 = vmul.f32 %v3659_v37, %v3659_v37 }
 0x124   : > { %v1101_v22 = vsel %vm417_vm0, %v1100_v17, %v1084_v39  ;;  %v1108_v23 = vrot.slane %v1089_v15, 3  ;;  %v1110_v26 = vrot.slane %v1090_v16, 2  ;;  %v3089_v56 = vmov 0.0  }
 0x125   : > { %v1103_v25 = vsel %vm420_vm1, %v1102_v36, %v1101_v22  ;;  %v1112_v52 = vrot.slane %v1091_v21, 1  ;;  %2673 = vmatprep.subr.bf16.mxu0 %v3089_v56  ;;  %2677 = vmatprep.mubr.msk.bf16.mxu0 %vm3090_vm8, %v3089_v56  ;;  %v3698_v36 = vld [vmem:[%s4236_s1] ss:$0 sm:$0xff] }
 0x126   : > { %v1105_v46 = vsel %vm423_vm2, %v1104_v18, %v1103_v25  ;;  %2674 = vmatpush3.bf16.msra.mxu0 %v2841_v63  ;;  %2681 = vmatprep.subr.bf16.mxu1 %v3089_v56 }
 0x127   : > { %v1107_v49 = vsel %vm426_vm3, %v1106_v19, %v1105_v46  ;;  %2675 = vmatprep.subr.bf16.mxu0 %v3089_v56  ;;  %2683 = vmatprep.mubr.msk.bf16.mxu1 %vm3090_vm8, %v3089_v56  ;;  %v3707_v46 = vld [vmem:[%s4237_s2] ss:$0 sm:$0xff] }
 0x128   : > { %v1109_v51 = vsel %vm429_vm4, %v1108_v23, %v1107_v49 }
 0x129   : > { %v1111_v53 = vsel %vm432_vm5, %v1110_v26, %v1109_v51 }
 0x12a   : > { %v1113_v54 = vsel %vm435_vm6, %v1112_v52, %v1111_v53  ;;  %2676 = vmatpush3.bf16.msra.mxu0 %v2842_v0 }
 0x12b   : > { %v1115_v59 = vsel %vm438_vm7, %v1113_v54, 0.0  ;;  %2687 = vmatprep.subr.bf16.mxu0 %v3089_v56 }
 0x12c   : > { %1116 = vadd.xlane.f32.xlu1 %v1115_v59 }
 0x19d   : > { %v501_v62 = vpop.xlane.xlu0 %500 }
 0x19e   : > { %v502_v57 = vmul.f32 0.03125, %v501_v62 }
 0x1a0   : > { %v503_v60 = vadd.f32 1e-05, %v502_v57 }
 0x1a1   : > { %v916_v38 = vpop.xlane.xlu0 %915 }
 0x1a2   : > { %2863 = vrsqrt.f32 %v503_v60  ;;  %v917_v39 = vmul.f32 0.03125, %v916_v38 }
 0x1a4   : > { %v918_v42 = vadd.f32 1e-05, %v917_v39 }
 0x1a6   : > { %2865 = vrsqrt.f32 %v918_v42 }
 0x1ac   : > { %v715_v43 = vpop.xlane.xlu1 %714 }
 0x1ad   : > { %v716_v44 = vmul.f32 0.03125, %v715_v43 }
 0x1af   : > { %v2864_v47 = vpop.eup %2863  ;;  %v717_v10 = vadd.f32 1e-05, %v716_v44 }
 0x1b0   : > { %v506_v48 = vrot.slane %v2864_v47, 1  ;;  %v507_v15 = vrot.slane %v2864_v47, 2  ;;  %v508_v16 = vrot.slane %v2864_v47, 3  ;;  %v509_v17 = vrot.slane %v2864_v47, 4 }
 0x1b1   : > { %2867 = vrsqrt.f32 %v717_v10  ;;  %v510_v18 = vrot.slane %v2864_v47, 5  ;;  %v511_v19 = vrot.slane %v2864_v47, 6  ;;  %v512_v21 = vrot.slane %v2864_v47, 7 }
 0x1b2   : > { %v521_v22 = vmul.f32 %v2864_v47, %v3510_v5  ;;  %v522_v23 = vmul.f32 %v506_v48, %v3515_v6  ;;  %v523_v25 = vmul.f32 %v507_v15, %v3518_v7  ;;  %v524_v26 = vmul.f32 %v508_v16, %v3521_v8 }
 0x1b3   : > { %v525_v49 = vmul.f32 %v509_v17, %v3524_v40  ;;  %v526_v51 = vmul.f32 %v510_v18, %v3527_v41  ;;  %v527_v52 = vmul.f32 %v511_v19, %v3530_v14  ;;  %v528_v53 = vmul.f32 %v512_v21, %v3533_v45 }
 0x1b4   : > { %v535_v5 = vmul.f32 %v3698_v36, %v521_v22  ;;  %v536_v6 = vmul.f32 %v3698_v36, %v522_v23  ;;  %v537_v7 = vmul.f32 %v3698_v36, %v523_v25  ;;  %v538_v8 = vmul.f32 %v3698_v36, %v524_v26  ;;  %v3761_v26 = vpop.eup %2865 }
 0x1b5   : > { %v539_v54 = vmul.f32 %v3698_v36, %v525_v49  ;;  %v540_v59 = vmul.f32 %v3698_v36, %v526_v51  ;;  %v541_v40 = vmul.f32 %v3698_v36, %v527_v52  ;;  %v542_v41 = vmul.f32 %v3698_v36, %v528_v53  ;;  %v1117_v63 = vpop.xlane.xlu1 %1116 }
 0x1b6   : > { %v3722_v14 = vadd.f32 %v3707_v46, %v535_v5  ;;  %v3725_v45 = vadd.f32 %v3707_v46, %v536_v6  ;;  %v3728_v0 = vadd.f32 %v3707_v46, %v537_v7  ;;  %v3731_v62 = vadd.f32 %v3707_v46, %v538_v8 }
 0x1b7   : > { %v1118_v57 = vmul.f32 0.03125, %v1117_v63  ;;  %v3734_v60 = vadd.f32 %v3707_v46, %v539_v54  ;;  %v3737_v38 = vadd.f32 %v3707_v46, %v540_v59  ;;  %v3740_v39 = vadd.f32 %v3707_v46, %v541_v40 }
 0x1b8   : > { %v3743_v42 = vadd.f32 %v3707_v46, %v542_v41  ;;  %v2605_v43 = vpack.c.bf16 %v3722_v14, %v3722_v14  ;;  %v2606_v44 = vpack.c.bf16 %v3725_v45, %v3725_v45  ;;  %v2607_v47 = vpack.c.bf16 %v3728_v0, %v3728_v0 }
 0x1b9   : > { %v1119_v10 = vadd.f32 1e-05, %v1118_v57  ;;  %v2608_v48 = vpack.c.bf16 %v3731_v62, %v3731_v62  ;;  %v2609_v15 = vpack.c.bf16 %v3734_v60, %v3734_v60  ;;  %v2610_v16 = vpack.c.bf16 %v3737_v38, %v3737_v38 }
 0x1ba   : > { %v2611_v17 = vpack.c.bf16 %v3740_v39, %v3740_v39  ;;  %v2612_v18 = vpack.c.bf16 %v3743_v42, %v3743_v42  ;;  %v598_v19 = vunpack.c.l.b16 %v2606_v44  ;;  %v597_v21 = vunpack.c.l.b16 %v2605_v43 }
 0x1bb   : > { %v599_v22 = vunpack.c.l.b16 %v2607_v47  ;;  %v600_v23 = vunpack.c.l.b16 %v2608_v48  ;;  %v601_v25 = vunpack.c.l.b16 %v2609_v15  ;;  %v602_v49 = vunpack.c.l.b16 %v2610_v16 }
 0x1bc   : > { %v603_v51 = vunpack.c.l.b16 %v2611_v17  ;;  %v604_v52 = vunpack.c.l.b16 %v2612_v18  ;;  %v605_v53 = vrot.slane %v598_v19, 7  ;;  %2869 = vrsqrt.f32 %v1119_v10 }
 0x1bd   : > { %v607_v5 = vrot.slane %v599_v22, 6  ;;  %v609_v6 = vrot.slane %v600_v23, 5  ;;  %v611_v7 = vrot.slane %v601_v25, 4  ;;  %v613_v59 = vrot.slane %v602_v49, 3 }
 0x1be   : > { %v2868_v8 = vpop.eup %2867  ;;  %v606_v54 = vsel %vm417_vm0, %v605_v53, %v597_v21  ;;  %v615_v40 = vrot.slane %v603_v51, 2  ;;  %v617_v41 = vrot.slane %v604_v52, 1 }
 0x1bf   : > { %v608_v63 = vsel %vm420_vm1, %v607_v5, %v606_v54  ;;  %v720_v57 = vrot.slane %v2868_v8, 1  ;;  %v721_v43 = vrot.slane %v2868_v8, 2  ;;  %v722_v44 = vrot.slane %v2868_v8, 3 }
 0x1c0   : > { %v610_v47 = vsel %vm423_vm2, %v609_v6, %v608_v63  ;;  %v723_v48 = vrot.slane %v2868_v8, 4  ;;  %v724_v15 = vrot.slane %v2868_v8, 5  ;;  %v725_v16 = vrot.slane %v2868_v8, 6 }
 0x1c1   : > { %v612_v10 = vsel %vm426_vm3, %v611_v7, %v610_v47  ;;  %v726_v17 = vrot.slane %v2868_v8, 7  ;;  %v735_v18 = vmul.f32 %v2868_v8, %v3581_v2  ;;  %v736_v19 = vmul.f32 %v720_v57, %v3585_v31 }
 0x1c2   : > { %v614_v21 = vsel %vm429_vm4, %v613_v59, %v612_v10  ;;  %v737_v22 = vmul.f32 %v721_v43, %v3588_v32  ;;  %v738_v23 = vmul.f32 %v722_v44, %v3591_v3  ;;  %v739_v25 = vmul.f32 %v723_v48, %v3595_v35 }
 0x1c3   : > { %v616_v49 = vsel %vm432_vm5, %v615_v40, %v614_v21  ;;  %v740_v51 = vmul.f32 %v724_v15, %v3598_v4  ;;  %v741_v52 = vmul.f32 %v725_v16, %v3601_v55  ;;  %v742_v53 = vmul.f32 %v726_v17, %v3605_v50 }
 0x1c4   : > { %v618_v2 = vsel %vm435_vm6, %v617_v41, %v616_v49  ;;  %v743_v31 = vmul.f32 %v3698_v36, %v735_v18  ;;  %v744_v5 = vmul.f32 %v3698_v36, %v736_v19  ;;  %v745_v32 = vmul.f32 %v3698_v36, %v737_v22 }
 0x1c5   : > { %v619_v6 = vpack.c.b16 %v618_v2, %v618_v2  ;;  %v746_v3 = vmul.f32 %v3698_v36, %v738_v23  ;;  %v747_v35 = vmul.f32 %v3698_v36, %v739_v25  ;;  %v748_v7 = vmul.f32 %v3698_v36, %v740_v51 }
 0x1c6   : > { %v749_v4 = vmul.f32 %v3698_v36, %v741_v52  ;;  %v750_v55 = vmul.f32 %v3698_v36, %v742_v53  ;;  %v751_v50 = vadd.f32 %v3707_v46, %v743_v31  ;;  %v752_v8 = vadd.f32 %v3707_v46, %v744_v5 }
 0x1c7   : > { %622 = vst.msk [vmem:[#allocation2] sm:$0xf] %vm621_vm9, %v619_v6  ;;  %v753_v54 = vadd.f32 %v3707_v46, %v745_v32  ;;  %v754_v59 = vadd.f32 %v3707_v46, %v746_v3  ;;  %v755_v40 = vadd.f32 %v3707_v46, %v747_v35  ;;  %v756_v41 = vadd.f32 %v3707_v46, %v748_v7 }
 0x1c8   : > { %v757_v63 = vadd.f32 %v3707_v46, %v749_v4  ;;  %v3795_v57 = vadd.f32 %v3707_v46, %v750_v55  ;;  %v3798_v43 = vadd.f32 %v751_v50, %v3722_v14  ;;  %v921_v44 = vrot.slane %v3761_v26, 1 }
 0x1c9   : > { %v3802_v47 = vadd.f32 %v752_v8, %v3725_v45  ;;  %v3805_v48 = vadd.f32 %v753_v54, %v3728_v0  ;;  %v3808_v15 = vadd.f32 %v754_v59, %v3731_v62  ;;  %v3811_v16 = vadd.f32 %v755_v40, %v3734_v60  ;;  %v3813_v10 = vpop.eup %2869 }
 0x1ca   : > { %v3816_v17 = vadd.f32 %v756_v41, %v3737_v38  ;;  %v3819_v14 = vadd.f32 %v757_v63, %v3740_v39  ;;  %v2613_v18 = vpack.c.bf16 %v751_v50, %v751_v50  ;;  %v2614_v45 = vpack.c.bf16 %v752_v8, %v752_v8 }
 0x1cb   : > { %v2615_v19 = vpack.c.bf16 %v753_v54, %v753_v54  ;;  %v2616_v21 = vpack.c.bf16 %v754_v59, %v754_v59  ;;  %v2617_v0 = vpack.c.bf16 %v755_v40, %v755_v40  ;;  %v2618_v22 = vpack.c.bf16 %v756_v41, %v756_v41 }
 0x1cc   : > { %v2619_v23 = vpack.c.bf16 %v757_v63, %v757_v63  ;;  %v2620_v62 = vpack.c.bf16 %v3795_v57, %v3795_v57  ;;  %v799_v60 = vunpack.c.l.b16 %v2613_v18  ;;  %v800_v25 = vunpack.c.l.b16 %v2614_v45 }
 0x1cd   : > { %v801_v49 = vunpack.c.l.b16 %v2615_v19  ;;  %v802_v51 = vunpack.c.l.b16 %v2616_v21  ;;  %v803_v52 = vunpack.c.l.b16 %v2617_v0  ;;  %v804_v38 = vunpack.c.l.b16 %v2618_v22 }
 0x1ce   : > { %v805_v53 = vunpack.c.l.b16 %v2619_v23  ;;  %v806_v2 = vunpack.c.l.b16 %v2620_v62  ;;  %v807_v39 = vrot.slane %v800_v25, 7  ;;  %v922_v31 = vrot.slane %v3761_v26, 2 }
 0x1cf   : > { %v809_v5 = vrot.slane %v801_v49, 6  ;;  %v811_v32 = vrot.slane %v802_v51, 5  ;;  %v813_v6 = vrot.slane %v803_v52, 4  ;;  %v815_v3 = vrot.slane %v804_v38, 3 }
 0x1d0   : > { %v808_v35 = vsel %vm417_vm0, %v807_v39, %v799_v60  ;;  %v817_v7 = vrot.slane %v805_v53, 2  ;;  %v819_v4 = vrot.slane %v806_v2, 1  ;;  %v923_v55 = vrot.slane %v3761_v26, 3 }
 0x1d1   : > { %v810_v50 = vsel %vm420_vm1, %v809_v5, %v808_v35  ;;  %v924_v8 = vrot.slane %v3761_v26, 4  ;;  %v925_v54 = vrot.slane %v3761_v26, 5  ;;  %v926_v59 = vrot.slane %v3761_v26, 6 }
 0x1d2   : > { %v812_v40 = vsel %vm423_vm2, %v811_v32, %v810_v50  ;;  %v927_v41 = vrot.slane %v3761_v26, 7  ;;  %v936_v63 = vmul.f32 %v3761_v26, %v3486_v12  ;;  %v937_v18 = vmul.f32 %v921_v44, %v3489_v20 }
 0x1d3   : > { %v814_v45 = vsel %vm426_vm3, %v813_v6, %v812_v40  ;;  %v938_v19 = vmul.f32 %v922_v31, %v3492_v24  ;;  %v939_v21 = vmul.f32 %v923_v55, %v3495_v27  ;;  %v940_v0 = vmul.f32 %v924_v8, %v3498_v28 }
 0x1d4   : > { %v816_v22 = vsel %vm429_vm4, %v815_v3, %v814_v45  ;;  %v941_v23 = vmul.f32 %v925_v54, %v3501_v29  ;;  %v942_v62 = vmul.f32 %v926_v59, %v3504_v30  ;;  %v943_v60 = vmul.f32 %v927_v41, %v3507_v1 }
 0x1d5   : > { %v818_v12 = vsel %vm432_vm5, %v817_v7, %v816_v22  ;;  %v944_v20 = vmul.f32 %v3698_v36, %v936_v63  ;;  %v945_v26 = vmul.f32 %v3698_v36, %v937_v18  ;;  %v946_v24 = vmul.f32 %v3698_v36, %v938_v19 }
 0x1d6   : > { %v820_v27 = vsel %vm435_vm6, %v819_v4, %v818_v12  ;;  %v947_v28 = vmul.f32 %v3698_v36, %v939_v21  ;;  %v948_v44 = vmul.f32 %v3698_v36, %v940_v0  ;;  %v949_v29 = vmul.f32 %v3698_v36, %v941_v23 }
 0x1d7   : > { %v821_v25 = vpack.c.b16 %v820_v27, %v820_v27  ;;  %v950_v30 = vmul.f32 %v3698_v36, %v942_v62  ;;  %v951_v1 = vmul.f32 %v3698_v36, %v943_v60  ;;  %v952_v49 = vadd.f32 %v3707_v46, %v944_v20 }
 0x1d8   : > { %v953_v51 = vadd.f32 %v3707_v46, %v945_v26  ;;  %v954_v52 = vadd.f32 %v3707_v46, %v946_v24  ;;  %v955_v38 = vadd.f32 %v3707_v46, %v947_v28  ;;  %v956_v53 = vadd.f32 %v3707_v46, %v948_v44 }
 0x1d9   : > { %v3860_v2 = vadd.f32 %v3795_v57, %v3743_v42  ;;  %823 = vst.msk [vmem:[#allocation2 + $0x4] sm:$0xf] %vm621_vm9, %v821_v25  ;;  %v957_v39 = vadd.f32 %v3707_v46, %v949_v29  ;;  %v958_v31 = vadd.f32 %v3707_v46, %v950_v30  ;;  %v3866_v5 = vadd.f32 %v3707_v46, %v951_v1 }
 0x1da   : > { %v3869_v32 = vadd.f32 %v952_v49, %v3798_v43  ;;  %v3872_v6 = vadd.f32 %v953_v51, %v3802_v47  ;;  %v3875_v3 = vadd.f32 %v954_v52, %v3805_v48  ;;  %v3878_v42 = vadd.f32 %v955_v38, %v3808_v15 }
 0x1db   : > { %v3881_v57 = vadd.f32 %v956_v53, %v3811_v16  ;;  %v3884_v35 = vadd.f32 %v957_v39, %v3816_v17  ;;  %v3887_v7 = vadd.f32 %v958_v31, %v3819_v14  ;;  %v2621_v43 = vpack.c.bf16 %v952_v49, %v952_v49 }
 0x1dc   : > { %v2622_v4 = vpack.c.bf16 %v953_v51, %v953_v51  ;;  %v2623_v55 = vpack.c.bf16 %v954_v52, %v954_v52  ;;  %v2624_v47 = vpack.c.bf16 %v955_v38, %v955_v38  ;;  %v2625_v50 = vpack.c.bf16 %v956_v53, %v956_v53 }
 0x1dd   : > { %v2626_v8 = vpack.c.bf16 %v957_v39, %v957_v39  ;;  %v2627_v48 = vpack.c.bf16 %v958_v31, %v958_v31  ;;  %v2628_v15 = vpack.c.bf16 %v3866_v5, %v3866_v5  ;;  %v1000_v54 = vunpack.c.l.b16 %v2621_v43 }
 0x1de   : > { %v1001_v59 = vunpack.c.l.b16 %v2622_v4  ;;  %v1002_v16 = vunpack.c.l.b16 %v2623_v55  ;;  %v1003_v40 = vunpack.c.l.b16 %v2624_v47  ;;  %v1004_v41 = vunpack.c.l.b16 %v2625_v50 }
 0x1df   : > { %v1005_v17 = vunpack.c.l.b16 %v2626_v8  ;;  %v1006_v63 = vunpack.c.l.b16 %v2627_v48  ;;  %v1007_v18 = vunpack.c.l.b16 %v2628_v15  ;;  %v1122_v14 = vrot.slane %v3813_v10, 1 }
 0x1e0   : > { %v1008_v45 = vrot.slane %v1001_v59, 7  ;;  %v1010_v19 = vrot.slane %v1002_v16, 6  ;;  %v1012_v21 = vrot.slane %v1003_v40, 5  ;;  %v1014_v0 = vrot.slane %v1004_v41, 4 }
 0x1e1   : > { %v1016_v22 = vrot.slane %v1005_v17, 3  ;;  %v1018_v23 = vrot.slane %v1006_v63, 2  ;;  %v1020_v62 = vrot.slane %v1007_v18, 1  ;;  %v1123_v60 = vrot.slane %v3813_v10, 2 }
 0x1e2   : > { %v1009_v12 = vsel %vm417_vm0, %v1008_v45, %v1000_v54  ;;  %v1124_v20 = vrot.slane %v3813_v10, 3  ;;  %v1125_v26 = vrot.slane %v3813_v10, 4  ;;  %v1126_v24 = vrot.slane %v3813_v10, 5 }
 0x1e3   : > { %v1011_v27 = vsel %vm420_vm1, %v1010_v19, %v1009_v12  ;;  %v1127_v28 = vrot.slane %v3813_v10, 6  ;;  %v1128_v44 = vrot.slane %v3813_v10, 7  ;;  %v1137_v29 = vmul.f32 %v3813_v10, %v3635_v11 }
 0x1e4   : > { %v1013_v25 = vsel %vm423_vm2, %v1012_v21, %v1011_v27  ;;  %v1138_v30 = vmul.f32 %v1122_v14, %v3639_v13  ;;  %v1139_v1 = vmul.f32 %v1123_v60, %v3642_v58  ;;  %v1140_v49 = vmul.f32 %v1124_v20, %v3645_v34 }
 0x1e5   : > { %v1015_v51 = vsel %vm426_vm3, %v1014_v0, %v1013_v25  ;;  %v1141_v52 = vmul.f32 %v1125_v26, %v3649_v61  ;;  %v1142_v38 = vmul.f32 %v1126_v24, %v3652_v9  ;;  %v1143_v53 = vmul.f32 %v1127_v28, %v3655_v33 }
 0x1e6   : > { %v1017_v39 = vsel %vm429_vm4, %v1016_v22, %v1015_v51  ;;  %v1144_v11 = vmul.f32 %v1128_v44, %v3659_v37  ;;  %v1145_v10 = vmul.f32 %v3698_v36, %v1137_v29  ;;  %v1146_v13 = vmul.f32 %v3698_v36, %v1138_v30 }
 0x1e7   : > { %v1019_v58 = vsel %vm432_vm5, %v1018_v23, %v1017_v39  ;;  %v1147_v34 = vmul.f32 %v3698_v36, %v1139_v1  ;;  %v1148_v31 = vmul.f32 %v3698_v36, %v1140_v49  ;;  %v1149_v61 = vmul.f32 %v3698_v36, %v1141_v52 }
 0x1e8   : > { %v1021_v9 = vsel %vm435_vm6, %v1020_v62, %v1019_v58  ;;  %v1150_v33 = vmul.f32 %v3698_v36, %v1142_v38  ;;  %v1151_v43 = vmul.f32 %v3698_v36, %v1143_v53  ;;  %v1152_v37 = vmul.f32 %v3698_v36, %v1144_v11 }
 0x1e9   : > { %v1022_v4 = vpack.c.b16 %v1021_v9, %v1021_v9  ;;  %v1153_v55 = vadd.f32 %v3707_v46, %v1145_v10  ;;  %v1154_v47 = vadd.f32 %v3707_v46, %v1146_v13  ;;  %v1155_v50 = vadd.f32 %v3707_v46, %v1147_v34 }
 0x1ea   : > { %v1156_v8 = vadd.f32 %v3707_v46, %v1148_v31  ;;  %v1157_v48 = vadd.f32 %v3707_v46, %v1149_v61  ;;  %v1158_v15 = vadd.f32 %v3707_v46, %v1150_v33  ;;  %v1159_v54 = vadd.f32 %v3707_v46, %v1151_v43 }
 0x1eb   : > { %v967_v59 = vadd.f32 %v3866_v5, %v3860_v2  ;;  %1024 = vst.msk [vmem:[#allocation2 + $0x8] sm:$0xf] %vm621_vm9, %v1022_v4  ;;  %v1160_v36 = vadd.f32 %v3707_v46, %v1152_v37  ;;  %v1161_v16 = vadd.f32 %v1153_v55, %v3869_v32  ;;  %v1162_v40 = vadd.f32 %v1154_v47, %v3872_v6 }
 0x1ec   : > { %v1163_v41 = vadd.f32 %v1155_v50, %v3875_v3  ;;  %v1164_v17 = vadd.f32 %v1156_v8, %v3878_v42  ;;  %v1165_v63 = vadd.f32 %v1157_v48, %v3881_v57  ;;  %v1166_v18 = vadd.f32 %v1158_v15, %v3884_v35 }
 0x1ed   : > { %v1167_v14 = vadd.f32 %v1159_v54, %v3887_v7  ;;  %v2629_v45 = vpack.c.bf16 %v1153_v55, %v1153_v55  ;;  %v2630_v2 = vpack.c.bf16 %v1154_v47, %v1154_v47  ;;  %v2631_v5 = vpack.c.bf16 %v1155_v50, %v1155_v50 }
 0x1ee   : > { %v2632_v19 = vpack.c.bf16 %v1156_v8, %v1156_v8  ;;  %v2633_v21 = vpack.c.bf16 %v1157_v48, %v1157_v48  ;;  %v2634_v46 = vpack.c.bf16 %v1158_v15, %v1158_v15  ;;  %v2635_v0 = vpack.c.bf16 %v1159_v54, %v1159_v54 }
 0x1ef   : > { %v1168_v32 = vadd.f32 %v1160_v36, %v967_v59  ;;  %v2636_v22 = vpack.c.bf16 %v1160_v36, %v1160_v36  ;;  %v1202_v6 = vunpack.c.l.b16 %v2630_v2  ;;  %v1203_v23 = vunpack.c.l.b16 %v2631_v5 }
 0x1f0   : > { %v1204_v3 = vunpack.c.l.b16 %v2632_v19  ;;  %v1205_v62 = vunpack.c.l.b16 %v2633_v21  ;;  %v1206_v42 = vunpack.c.l.b16 %v2634_v46  ;;  %v1207_v60 = vunpack.c.l.b16 %v2635_v0 }
 0x1f1   : > { %v1201_v57 = vunpack.c.l.b16 %v2629_v45  ;;  %v1208_v12 = vunpack.c.l.b16 %v2636_v22  ;;  %v1209_v35 = vrot.slane %v1202_v6, 7  ;;  %v1211_v20 = vrot.slane %v1203_v23, 6 }
 0x1f2   : > { %v1213_v7 = vrot.slane %v1204_v3, 5  ;;  %v1215_v26 = vrot.slane %v1205_v62, 4  ;;  %v1217_v24 = vrot.slane %v1206_v42, 3  ;;  %v1226_v27 = vmul.f32 0.25, %v1161_v16 }
 0x1f3   : > { %v1210_v28 = vsel %vm417_vm0, %v1209_v35, %v1201_v57  ;;  %v1219_v44 = vrot.slane %v1207_v60, 2  ;;  %v1227_v29 = vmul.f32 0.25, %v1162_v40  ;;  %v1228_v25 = vmul.f32 0.25, %v1163_v41 }
 0x1f4   : > { %v1212_v30 = vsel %vm420_vm1, %v1211_v20, %v1210_v28  ;;  %v1229_v1 = vmul.f32 0.25, %v1164_v17  ;;  %v1230_v49 = vmul.f32 0.25, %v1165_v63  ;;  %v1231_v51 = vmul.f32 0.25, %v1166_v18  ;;  %v2845_v28 = vld [vmem:[#allocation11] sm:$0xff]  }
 0x1f5   : > { %v1214_v52 = vsel %vm423_vm2, %v1213_v7, %v1212_v30  ;;  %v1221_v38 = vrot.slane %v1208_v12, 1  ;;  %v1232_v53 = vmul.f32 0.25, %v1167_v14  ;;  %v1233_v39 = vmul.f32 0.25, %v1168_v32 }
 0x1f6   : > { %v1216_v11 = vsel %vm426_vm3, %v1215_v26, %v1214_v52  ;;  %v1235_v10 = vpack.c.bf16 %v1227_v29, %v1227_v29  ;;  %v1236_v13 = vpack.c.bf16 %v1228_v25, %v1228_v25  ;;  %v1237_v58 = vpack.c.bf16 %v1229_v1, %v1229_v1  ;;  %v2843_v26 = vld [vmem:[#allocation11 + $0x8] sm:$0xff]   ;;  %v2844_v25 = vld [vmem:[#allocation2] sm:$0xff]  }
 0x1f7   : > { %v1218_v34 = vsel %vm429_vm4, %v1217_v24, %v1216_v11  ;;  %v1234_v31 = vpack.c.bf16 %v1226_v27, %v1226_v27  ;;  %v1238_v61 = vpack.c.bf16 %v1230_v49, %v1230_v49  ;;  %v1239_v9 = vpack.c.bf16 %v1231_v51, %v1231_v51 }
 0x1f8   : > { %v1220_v33 = vsel %vm432_vm5, %v1219_v44, %v1218_v34  ;;  %v1240_v43 = vpack.c.bf16 %v1232_v53, %v1232_v53  ;;  %v1255_v37 = vunpack.c.l.b16 %v1235_v10  ;;  %v1241_v55 = vpack.c.bf16 %v1233_v39, %v1233_v39 }
 0x1f9   : > { %v1222_v4 = vsel %vm435_vm6, %v1221_v38, %v1220_v33  ;;  %v1256_v47 = vunpack.c.l.b16 %v1236_v13  ;;  %v1257_v50 = vunpack.c.l.b16 %v1237_v58  ;;  %v1258_v48 = vunpack.c.l.b16 %v1238_v61 }
 0x1fa   : > { %v1223_v8 = vpack.c.b16 %v1222_v4, %v1222_v4  ;;  %v1254_v15 = vunpack.c.l.b16 %v1234_v31  ;;  %v1259_v54 = vunpack.c.l.b16 %v1239_v9  ;;  %v1262_v59 = vrot.slane %v1255_v37, 7 }
 0x1fb   : > { %v1264_v36 = vrot.slane %v1256_v47, 6  ;;  %v1260_v16 = vunpack.c.l.b16 %v1240_v43  ;;  %v1261_v40 = vunpack.c.l.b16 %v1241_v55  ;;  %v1266_v17 = vrot.slane %v1257_v50, 5 }
 0x1fc   : > { %1225 = vst.msk [vmem:[#allocation2 + $0xc] sm:$0xf] %vm621_vm9, %v1223_v8  ;;  %v1263_v41 = vsel %vm417_vm0, %v1262_v59, %v1254_v15  ;;  %v1268_v18 = vrot.slane %v1258_v48, 4  ;;  %v1270_v45 = vrot.slane %v1259_v54, 3  ;;  %vm1949_vm0 = vcmask 191616  }
 0x1fd   : > { %v1265_v63 = vsel %vm420_vm1, %v1264_v36, %v1263_v41  ;;  %v1272_v5 = vrot.slane %v1260_v16, 2  ;;  %v1274_v21 = vrot.slane %v1261_v40, 1  ;;  %vm2038_vm1 = vcmask 257216  }
 0x1fe   : > { %v1267_v14 = vsel %vm423_vm2, %v1266_v17, %v1265_v63  ;;  %vm2204_vm2 = vcmask 253952  }
 0x1ff   : > { %v1269_v2 = vsel %vm426_vm3, %v1268_v18, %v1267_v14 }
 0x200   : > { %v1271_v19 = vsel %vm429_vm4, %v1270_v45, %v1269_v2 }
 0x201   : > { %v1273_v46 = vsel %vm432_vm5, %v1272_v5, %v1271_v19 }
 0x202   : > { %v1275_v0 = vsel %vm435_vm6, %v1274_v21, %v1273_v46 }
 0x203   : > { %v1276_v32 = vpack.c.b16 %v1275_v0, %v1275_v0  ;;  %v2846_v30 = vld [vmem:[#allocation2 + $0x8] sm:$0xff]  }
 0x205   : > { %2678 = vmatmul.mubr.msk.bf16.vlgmr.msra.gmra.mxu0 %vm438_vm7, %v1276_v32 }
 0x206   : > { %2689 = vmatprep.mubr.msk.bf16.mxu0 %vm3090_vm8, %v3089_v56 }
 0x2c5   : > { %v1326_v22 = vpop.f32.mrf.mxu0 }
 0x2c6   : > { %v1332_v6 = vpack.c.bf16 %v1326_v22, %v1326_v22 }
 0x2c7   : > { %v2679_v23 = vpop.f32.mrf.mxu0 }
 0x2c8   : > { %1398 = vrot.lane.b32.xlu1 %v1332_v6, %s3091_s21  ;;  %1334 = vrot.lane.b32.xlu0 %v1332_v6, %s3092_s20 }
 0x2c9   : > { %v1329_v3 = vpop.f32.mrf.mxu0 }
 0x2cb   : > { %v2680_v62 = vpop.f32.mrf.mxu0 }
 0x2cc   : > { %1461 = vrot.lane.b32.xlu1 %v1332_v6, %s3093_s24  ;;  %1524 = vrot.lane.b32.xlu0 %v1332_v6, %s3094_s10  ;;  %s4094_s24 = scalar_lea.vmem [#allocation14], %s2510_s4  ;;  %s2645_s4 = sshll.u32 %s3179_s8, 9 }
 0x2cd   : > { %s2398_s10 = sshll.u32 %s4094_s24, 4  ;;  %s4176_s10 = int_to_ptr.vmem [resolvable:$true] %s2398_s10 }
 0x2d0   : > { %1396 = vrot.lane.b32.xlu1 %v1332_v6, %s3095_s15  ;;  %1522 = vrot.lane.b32.xlu0 %v1332_v6, %s3096_s28 }
 0x2d4   : > { %1459 = vrot.lane.b32.xlu1 %v1332_v6, %s3097_s19 }
 0x33a   : > { %v1399_v42 = vpop.permute.xlu1 %1398  ;;  %v1335_v60 = vpop.permute.xlu0 %1334 }
 0x33b   : > { %v1404_v57 = vsel %vm1336_vm10, %v1399_v42, 0  ;;  %v1341_v12 = vsel %vm1336_vm10, %v1335_v60, 0 }
 0x33c   : > { %2682 = vmatpush3.bf16.xpose.msra.mxu1 %v1341_v12  ;;  %2688 = vmatpush3.bf16.xpose.msra.mxu0 %v1404_v57 }
 0x33d   : > { %2693 = vmatprep.subr.bf16.mxu1 %v3089_v56  ;;  %2699 = vmatprep.subr.bf16.mxu0 %v3089_v56 }
 0x33e   : > { %v1462_v35 = vpop.permute.xlu1 %1461  ;;  %v1525_v20 = vpop.permute.xlu0 %1524 }
 0x33f   : > { %v1467_v24 = vsel %vm1336_vm10, %v1462_v35, 0  ;;  %v1530_v27 = vsel %vm1336_vm10, %v1525_v20, 0 }
 0x342   : > { %v1397_v7 = vpop.permute.xlu1 %1396  ;;  %v1523_v44 = vpop.permute.xlu0 %1522 }
 0x343   : > { %2684 = vmatmul.mubr.msk.bf16.vlgmr.msra.gmra.mxu1 %vm1336_vm10, %v1332_v6  ;;  %2690 = vmatmul.mubr.msk.bf16.vlgmr.msra.gmra.mxu0 %vm1336_vm10, %v1397_v7 }
 0x344   : > { %2694 = vmatpush3.bf16.xpose.msra.mxu1 %v1467_v24  ;;  %2700 = vmatpush3.bf16.xpose.msra.mxu0 %v1530_v27 }
 0x345   : > { %2695 = vmatprep.mubr.msk.bf16.mxu1 %vm3090_vm8, %v3089_v56  ;;  %2701 = vmatprep.mubr.msk.bf16.mxu0 %vm3090_vm8, %v3089_v56 }
 0x346   : > { %2705 = vmatprep.subr.bf16.mxu1 %v2843_v26  ;;  %2713 = vmatprep.subr.bf16.mxu0 %v3089_v56  ;;  %v1460_v29 = vpop.permute.xlu1 %1459 }
 0x34b   : > { %2696 = vmatmul.mubr.msk.bf16.vlgmr.msra.gmra.mxu1 %vm1336_vm10, %v1460_v29  ;;  %2702 = vmatmul.mubr.msk.bf16.vlgmr.msra.gmra.mxu0 %vm1336_vm10, %v1523_v44 }
 0x34c   : > { %2706 = vmatpush3.bf16.msra.mxu1 %v2843_v26  ;;  %2709 = vmatprep.mubr.msk.bf16.mxu1 %vm438_vm7, %v2844_v25 }
 0x34d   : > { %2707 = vmatprep.subr.bf16.mxu1 %v2845_v28  ;;  %2715 = vmatprep.mubr.msk.bf16.mxu0 %vm3090_vm8, %v3089_v56 }
 0x350   : > { %2708 = vmatpush3.bf16.msra.mxu1 %v2845_v28 }
 0x351   : > { %2719 = vmatprep.subr.bf16.mxu1 %v3089_v56 }
 0x353   : > { %2710 = vmatmul.mubr.msk.bf16.vlgmr.msra.gmra.mxu1 %vm438_vm7, %v2846_v30 }
 0x354   : > { %2721 = vmatprep.mubr.msk.bf16.mxu1 %vm3090_vm8, %v3089_v56 }
 0x403   : > { %v1377_v1 = vpop.f32.mrf.mxu1  ;;  %v1440_v49 = vpop.f32.mrf.mxu0 }
 0x404   : > { %v3983_v51 = vmul.f32 0.35355338, %v1377_v1  ;;  %v3985_v52 = vmul.f32 0.35355338, %v1440_v49 }
 0x405   : > { %v2685_v38 = vpop.f32.mrf.mxu1  ;;  %v2691_v53 = vpop.f32.mrf.mxu0 }
 0x406   : > { %v1384_v39 = vsel %vm1336_vm10, %v3983_v51, -inf  ;;  %v1447_v11 = vsel %vm1336_vm10, %v3985_v52, -inf }
 0x407   : > { %1385 = vmax.xlane.f32.xlu1 %v1384_v39  ;;  %v1380_v10 = vpop.f32.mrf.mxu1  ;;  %1448 = vmax.xlane.f32.xlu0 %v1447_v11  ;;  %v1443_v13 = vpop.f32.mrf.mxu0 }
 0x409   : > { %v2686_v58 = vpop.f32.mrf.mxu1  ;;  %v2692_v34 = vpop.f32.mrf.mxu0 }
 0x40b   : > { %v1503_v31 = vpop.f32.mrf.mxu1  ;;  %v1566_v61 = vpop.f32.mrf.mxu0 }
 0x40c   : > { %v1509_v9 = vmul.f32 0.35355338, %v1503_v31  ;;  %v1572_v37 = vmul.f32 0.35355338, %v1566_v61 }
 0x40d   : > { %v2697_v33 = vpop.f32.mrf.mxu1  ;;  %v2703_v43 = vpop.f32.mrf.mxu0 }
 0x40e   : > { %v1510_v4 = vsel %vm1336_vm10, %v1509_v9, -inf  ;;  %v1573_v48 = vsel %vm1336_vm10, %v1572_v37, -inf }
 0x40f   : > { %v1506_v55 = vpop.f32.mrf.mxu1  ;;  %1511 = vmax.xlane.f32.xlu0 %v1510_v4  ;;  %v1569_v47 = vpop.f32.mrf.mxu0 }
 0x411   : > { %v2698_v50 = vpop.f32.mrf.mxu1  ;;  %v2704_v8 = vpop.f32.mrf.mxu0 }
 0x413   : > { %1574 = vmax.xlane.f32.xlu0 %v1573_v48  ;;  %v2711_v15 = vpop.f32.mrf.mxu1 }
 0x414   : > { %v2639_v54 = vpack.c.bf16 %v2711_v15, %v2711_v15 }
 0x415   : > { %v1655_v59 = vpop.f32.mrf.mxu1 }
 0x416   : > { %1688 = vst.msk [vmem:[#allocation3 + $0x8] sm:$0xf] %vm621_vm9, %v2639_v54  ;;  %v2637_v36 = vpack.c.bf16 %v1655_v59, %v1655_v59 }
 0x417   : > { %v2712_v16 = vpop.f32.mrf.mxu1 }
 0x418   : > { %1686 = vst.msk [vmem:[#allocation3] sm:$0xf] %vm621_vm9, %v2637_v36  ;;  %v2640_v40 = vpack.c.bf16 %v2712_v16, %v2712_v16 }
 0x419   : > { %v1658_v41 = vpop.f32.mrf.mxu1 }
 0x41a   : > { %1689 = vst.msk [vmem:[#allocation3 + $0xc] sm:$0xf] %vm621_vm9, %v2640_v40  ;;  %v2638_v17 = vpack.c.bf16 %v1658_v41, %v1658_v41 }
 0x41c   : > { %1687 = vst.msk [vmem:[#allocation3 + $0x4] sm:$0xf] %vm621_vm9, %v2638_v17 }
 0x41d   : > { %v2847_v63 = vld [vmem:[#allocation3 + $0x8] ss:$0 sps:$4 sm:$0xff]  }
 0x41e   : > { %1794 = vrot.lane.b32.xlu1 %v2847_v63, %s3098_s25  ;;  %v2850_v45 = vld [vmem:[#allocation3 + $0x8] ss:$0 sps:$4 sm:$0xff]  }
 0x41f   : > { %v2848_v18 = vld [vmem:[#allocation3] ss:$0 sps:$4 sm:$0xff]   ;;  %v2858_v4 = vld [vmem:[#allocation3 + $0x8] ss:$0 sps:$4 sm:$0xff]  }
 0x420   : > { %v2849_v14 = vld [vmem:[#allocation3] ss:$0 sps:$4 sm:$0xff]   ;;  %v1873_v16 = vld [vmem:[#allocation3 + $0x8] sm:$0xf] }
 0x421   : > { %v2851_v2 = vld [vmem:[#allocation3] ss:$0 sps:$4 sm:$0xff]   ;;  %v2852_v5 = vld [vmem:[#allocation3 + $0xc] ss:$0 sps:$4 sm:$0xff]  }
 0x422   : > { %1789 = vrot.lane.b32.xlu1 %v2848_v18, %s3095_s15  ;;  %v2853_v19 = vld [vmem:[#allocation3 + $0xc] ss:$0 sps:$4 sm:$0xff]   ;;  %v1690_v11 = vld [vmem:[#allocation3] sm:$0xf] }
 0x423   : > { %v2854_v21 = vld [vmem:[#allocation3 + $0x4] ss:$0 sps:$4 sm:$0xff]  }
 0x424   : > { %v2855_v46 = vld [vmem:[#allocation3 + $0x4] ss:$0 sps:$4 sm:$0xff]  }
 0x425   : > { %v2856_v0 = vld [vmem:[#allocation3 + $0x4] ss:$0 sps:$4 sm:$0xff]  }
 0x426   : > { %1878 = vrot.lane.b32.xlu1 %v2849_v14, %s3097_s19  ;;  %v1783_v27 = vld [vmem:[#allocation3 + $0x4] sm:$0xf] }
 0x429   : > { %1702 = vrot.lane.b32.xlu0 %v2850_v45, %s3099_s16 }
 0x42a   : > { %1967 = vrot.lane.b32.xlu1 %v2851_v2, %s3096_s28  ;;  %v1963_v2 = vld [vmem:[#allocation3 + $0xc] sm:$0xf] }
 0x42d   : > { %1799 = vrot.lane.b32.xlu0 %v2852_v5, %s3099_s16 }
 0x42e   : > { %1707 = vrot.lane.b32.xlu1 %v2853_v19, %s3100_s18 }
 0x431   : > { %1883 = vrot.lane.b32.xlu0 %v2854_v21, %s3095_s15 }
 0x432   : > { %1697 = vrot.lane.b32.xlu1 %v2855_v46, %s3098_s25 }
 0x435   : > { %1972 = vrot.lane.b32.xlu0 %v2856_v0, %s3097_s19 }
 0x490   : > { %v1386_v32 = vpop.xlane.xlu1 %1385  ;;  %v1449_v22 = vpop.xlane.xlu0 %1448 }
 0x491   : > { %v1387_v6 = vsub.f32 %v3983_v51, %v1386_v32  ;;  %v1450_v23 = vsub.f32 %v3985_v52, %v1449_v22 }
 0x493   : > { %v1388_v3 = vmul.f32 1.442695, %v1387_v6  ;;  %v1451_v62 = vmul.f32 1.442695, %v1450_v23 }
 0x494   : > { %v1795_v42 = vpop.permute.xlu1 %1794 }
 0x495   : > { %2871 = vpow2.f32 %v1388_v3 }
 0x496   : > { %2873 = vpow2.f32 %v1451_v62 }
 0x498   : > { %v1512_v60 = vpop.xlane.xlu0 %1511  ;;  %v1790_v57 = vpop.permute.xlu1 %1789 }
 0x499   : > { %v1513_v12 = vsub.f32 %v1509_v9, %v1512_v60  ;;  %v1803_v29 = vsel %vm1336_vm10, %v1790_v57, %v1783_v27 }
 0x49a   : > { %v1805_v51 = vsel %vm1712_vm11, %v1803_v29, %v1795_v42  ;;  %v2859_v29 = vld [vmem:[#allocation12 + $0x8] sm:$0xff]  }
 0x49b   : > { %v1514_v35 = vmul.f32 1.442695, %v1513_v12 }
 0x49c   : > { %v1575_v20 = vpop.xlane.xlu0 %1574  ;;  %v1879_v7 = vpop.permute.xlu1 %1878 }
 0x49d   : > { %2875 = vpow2.f32 %v1514_v35  ;;  %v1576_v26 = vsub.f32 %v1572_v37, %v1575_v20  ;;  %v2857_v37 = vld [vmem:[#allocation3 + $0xc] ss:$0 sps:$4 sm:$0xff]  }
 0x49f   : > { %v1577_v24 = vmul.f32 1.442695, %v1576_v26 }
 0x4a0   : > { %v1703_v28 = vpop.permute.xlu0 %1702  ;;  %v1968_v44 = vpop.permute.xlu1 %1967 }
 0x4a1   : > { %2877 = vpow2.f32 %v1577_v24 }
 0x4a2   : > { %v2872_v25 = vpop.eup %2871 }
 0x4a3   : > { %v2874_v30 = vpop.eup %2873  ;;  %v1390_v1 = vsel %vm1336_vm10, %v2872_v25, 0.0 }
 0x4a4   : > { %v1800_v49 = vpop.permute.xlu0 %1799  ;;  %v1708_v52 = vpop.permute.xlu1 %1707  ;;  %v1453_v38 = vsel %vm1336_vm10, %v2874_v30, 0.0  ;;  %1391 = vadd.xlane.f32.xlu1 %v1390_v1 }
 0x4a5   : > { %v1807_v53 = vsel %vm1715_vm12, %v1805_v51, %v1800_v49  ;;  %1454 = vadd.xlane.f32.xlu0 %v1453_v38 }
 0x4a6   : > { %v1811_v39 = vsel %vm1721_vm13, %v1807_v53, 0 }
 0x4a7   : > { %2720 = vmatpush3.bf16.msra.mxu1 %v1811_v39 }
 0x4a8   : > { %v1698_v10 = vpop.permute.xlu1 %1697  ;;  %2731 = vmatprep.subr.bf16.mxu1 %v3089_v56  ;;  %v1884_v55 = vpop.permute.xlu0 %1883 }
 0x4a9   : > { %v1711_v13 = vsel %vm1336_vm10, %v1690_v11, %v1698_v10  ;;  %v1892_v15 = vsel %vm1336_vm10, %v1879_v7, %v1884_v55 }
 0x4aa   : > { %v2876_v58 = vpop.eup %2875  ;;  %v1714_v34 = vsel %vm1712_vm11, %v1711_v13, %v1703_v28  ;;  %v1894_v41 = vsel %vm1712_vm11, %v1892_v15, %v1873_v16 }
 0x4ab   : > { %v1516_v31 = vsel %vm1336_vm10, %v2876_v58, 0.0  ;;  %v1717_v61 = vsel %vm1715_vm12, %v1714_v34, %v1708_v52 }
 0x4ac   : > { %1517 = vadd.xlane.f32.xlu1 %v1516_v31  ;;  %v1722_v9 = vsel %vm1721_vm13, %v1717_v61, 0  ;;  %v1973_v47 = vpop.permute.xlu0 %1972 }
 0x4ad   : > { %2714 = vmatpush3.bf16.msra.mxu0 %v1722_v9  ;;  %v1981_v63 = vsel %vm1336_vm10, %v1968_v44, %v1973_v47 }
 0x4ae   : > { %v2878_v33 = vpop.eup %2877  ;;  %2725 = vmatprep.subr.bf16.mxu0 %v3089_v56 }
 0x4af   : > { %v1579_v43 = vsel %vm1336_vm10, %v2878_v33, 0.0 }
 0x4b0   : > { %1580 = vadd.xlane.f32.xlu0 %v1579_v43 }
 0x4bd   : > { %1888 = vrot.lane.b32.xlu1 %v2857_v37, %s3098_s25 }
 0x4c6   : > { %1977 = vrot.lane.b32.xlu0 %v2858_v4, %s3095_s15 }
 0x52d   : > { %v1392_v50 = vpop.xlane.xlu1 %1391 }
 0x52e   : > { %v1455_v8 = vpop.xlane.xlu0 %1454  ;;  %2879 = vrcp.f32 %v1392_v50 }
 0x52f   : > { %2881 = vrcp.f32 %v1455_v8  ;;  %v2586_v8 = vld [vmem:[%s4241_s6] ss:$0 sm:$0xff] }
 0x535   : > { %v1518_v48 = vpop.xlane.xlu1 %1517 }
 0x536   : > { %2883 = vrcp.f32 %v1518_v48 }
 0x539   : > { %v1581_v54 = vpop.xlane.xlu0 %1580  ;;  %v1889_v59 = vpop.permute.xlu1 %1888 }
 0x53a   : > { %2885 = vrcp.f32 %v1581_v54  ;;  %v1896_v18 = vsel %vm1715_vm12, %v1894_v41, %v1889_v59 }
 0x53b   : > { %v2880_v36 = vpop.eup %2879  ;;  %v1900_v0 = vsel %vm1721_vm13, %v1896_v18, 0 }
 0x53c   : > { %v2882_v40 = vpop.eup %2881  ;;  %v1394_v17 = vmul.f32 %v2880_v36, %v2872_v25  ;;  %v2860_v25 = vld [vmem:[#allocation12] sm:$0xff]   ;;  %v2593_v36 = vld [vmem:[%s4242_s7] ss:$0 sm:$0xff] }
 0x53d   : > { %v1978_v14 = vpop.permute.xlu0 %1977  ;;  %v1457_v45 = vmul.f32 %v2882_v40, %v2874_v30 }
 0x53e   : > { %v1983_v5 = vsel %vm1712_vm11, %v1981_v63, %v1978_v14  ;;  %v1395_v19 = vpack.c.bf16 %v1394_v17, %v1394_v17 }
 0x53f   : > { %v1985_v21 = vsel %vm1715_vm12, %v1983_v5, %v1963_v2  ;;  %v1458_v46 = vpack.c.bf16 %v1457_v45, %v1457_v45 }
 0x540   : > { %2716 = vmatmul.mubr.msk.bf16.vlgmr.msra.gmra.mxu0 %vm1336_vm10, %v1395_v19  ;;  %v1989_v32 = vsel %vm1721_vm13, %v1985_v21, 0  ;;  %v3101_v21 = vmov 0  }
 0x541   : > { %2722 = vmatmul.mubr.msk.bf16.vlgmr.msra.gmra.mxu1 %vm1336_vm10, %v1458_v46  ;;  %2726 = vmatpush3.bf16.msra.mxu0 %v1900_v0  ;;  %v2594_v46 = vld [vmem:[#allocation5] ss:$0 sm:$0xff] }
 0x542   : > { %2732 = vmatpush3.bf16.msra.mxu1 %v1989_v32  ;;  %2727 = vmatprep.mubr.msk.bf16.mxu0 %vm3090_vm8, %v3089_v56 }
 0x543   : > { %v2884_v22 = vpop.eup %2883  ;;  %2733 = vmatprep.mubr.msk.bf16.mxu1 %vm3090_vm8, %v3089_v56  ;;  %2737 = vmatprep.subr.bf16.mxu0 %v2859_v29 }
 0x544   : > { %v1520_v6 = vmul.f32 %v2884_v22, %v2876_v58  ;;  %2839 = vset.pattern.permute.xlu0 %v3101_v21  ;;  %2840 = vset.pattern.permute.xlu1 %v3101_v21  ;;  %v2294_v21 = vld [vmem:[%s3311_s26 + $0x1e] sm:$0x1] }
 0x546   : > { %v1521_v23 = vpack.c.bf16 %v1520_v6, %v1520_v6 }
 0x547   : > { %v2886_v3 = vpop.eup %2885 }
 0x548   : > { %2728 = vmatmul.mubr.msk.bf16.vlgmr.msra.gmra.mxu0 %vm1336_vm10, %v1521_v23  ;;  %v1583_v62 = vmul.f32 %v2886_v3, %v2878_v33 }
 0x549   : > { %2738 = vmatpush3.bf16.msra.mxu0 %v2859_v29 }
 0x54a   : > { %v1584_v42 = vpack.c.bf16 %v1583_v62, %v1583_v62  ;;  %2739 = vmatprep.subr.bf16.mxu0 %v2860_v25 }
 0x54c   : > { %2734 = vmatmul.mubr.msk.bf16.vlgmr.msra.gmra.mxu1 %vm1336_vm10, %v1584_v42 }
 0x54d   : > { %2740 = vmatpush3.bf16.msra.mxu0 %v2860_v25 }
 0x600   : > { %v1758_v60 = vpop.f32.mrf.mxu0 }
 0x601   : > { %v1764_v57 = vpack.c.bf16 %v1758_v60, %v1758_v60  ;;  %v1847_v12 = vpop.f32.mrf.mxu1 }
 0x602   : > { %v2717_v35 = vpop.f32.mrf.mxu0  ;;  %v1853_v7 = vpack.c.bf16 %v1847_v12, %v1847_v12 }
 0x603   : > { %v2723_v20 = vpop.f32.mrf.mxu1  ;;  %1774 = vrot.lane.b32.xlu0 %v1764_v57, %s3097_s19  ;;  %1770 = vrot.lane.b32.xlu1 %v1764_v57, %s3095_s15  ;;  %1766 = vst.msk [vmem:[#allocation4] sm:$0xf] %vm1765_vm14, %v1764_v57 }
 0x604   : > { %v1761_v56 = vpop.f32.mrf.mxu0 }
 0x605   : > { %v1850_v26 = vpop.f32.mrf.mxu1 }
 0x606   : > { %v2718_v24 = vpop.f32.mrf.mxu0 }
 0x607   : > { %v2724_v27 = vpop.f32.mrf.mxu1  ;;  %1857 = vrot.lane.b32.xlu0 %v1853_v7, %s3098_s25  ;;  %1778 = vrot.lane.b32.xlu1 %v1764_v57, %s3096_s28  ;;  %s2385_s28 = scalar_lea.sflag [#allocation8], %s3305_s3 }
 0x608   : > { %v1936_v28 = vpop.f32.mrf.mxu0 }
 0x609   : > { %v1942_v49 = vpack.c.bf16 %v1936_v28, %v1936_v28 }
 0x60a   : > { %v2729_v44 = vpop.f32.mrf.mxu0 }
 0x60b   : > { %1867 = vrot.lane.b32.xlu0 %v1853_v7, %s3097_s19  ;;  %1863 = vrot.lane.b32.xlu1 %v1853_v7, %s3095_s15  ;;  %s3009_s19 = scalar_lea.vmem %s4176_s10, 512 }
 0x60c   : > { %v1939_v30 = vpop.f32.mrf.mxu0  ;;  %v2025_v1 = vpop.f32.mrf.mxu1  ;;  %p3010_p7 = scmp.ne.s32.totalorder %s4176_s10, %s3009_s19 }
 0x60d   : > { %v2031_v53 = vpack.c.bf16 %v2025_v1, %v2025_v1 }
 0x60e   : > { %v2730_v51 = vpop.f32.mrf.mxu0  ;;  %v2735_v52 = vpop.f32.mrf.mxu1  ;;  %p3011_p12 = pnand %p3010_p7, %p4269_p1 }
 0x60f   : > { %1951 = vrot.lane.b32.xlu0 %v1942_v49, %s3098_s25  ;;  %1946 = vrot.lane.b32.xlu1 %v1942_v49, %s3099_s16  ;;  %v2173_v51 = vld [vmem:[%s3311_s26 + $0x4] sm:$0x1] }
 0x610   : > { %v2028_v38 = vpop.f32.mrf.mxu1  ;;  %p3012_p9 = pneg %p3011_p12 }
 0x611   : > { %v2174_v38 = vld [vmem:[%s3311_s26 + $0x8] sm:$0x1] }
 0x612   : > { %v2736_v39 = vpop.f32.mrf.mxu1 }
 0x613   : > { %2035 = vrot.lane.b32.xlu0 %v2031_v53, %s3100_s18  ;;  %1956 = vrot.lane.b32.xlu1 %v1942_v49, %s3095_s15  ;;  %s4174_s15 = scalar_lea.hbm %s4244_s9, %s2645_s4 }
 0x617   : > { %2044 = vrot.lane.b32.xlu0 %v2031_v53, %s3098_s25  ;;  %2040 = vrot.lane.b32.xlu1 %v2031_v53, %s3099_s16  ;;  %s3102_s25 = smov [#allocation14]  }
 0x618   : > { %s3013_s16 = sshll.u32 %s3102_s25, 4  ;;  %s3014_s16 = int_to_ptr.vmem [resolvable:$false] %s3013_s16 }
 0x619   : > { %s3015_s18 = scalar_lea.vmem %s3014_s16, 1024  ;;  %p3016_p13 = scmp.lt.s32.totalorder %s4176_s10, %s3014_s16 }
 0x61a   : > { %p3017_p0 = scmp.lt.s32.totalorder %s3015_s18, %s3009_s19 }
 0x61c   : > { %p3018_p2 = por %p3017_p0, %p3016_p13 }
 0x61e   : > { %p3019_p10 = pnand %p3018_p2, %p3012_p9 }
 0x675   : > { %v1775_v11 = vpop.permute.xlu0 %1774  ;;  %v1771_v10 = vpop.permute.xlu1 %1770 }
 0x676   : > { %1777 = vst.msk [vmem:[#allocation4 + $0x8] sm:$0xf] %vm1765_vm14, %v1775_v11  ;;  %1773 = vst.msk [vmem:[#allocation4 + $0x4] sm:$0xf] %vm1765_vm14, %v1771_v10  ;;  %v2176_v11 = vld [vmem:[%s3311_s26 + $0x10] sm:$0x1] }
 0x677   : > { %1862 = vst.msk [vmem:[#allocation4 + $0x4] sm:$0xf] %vm1860_vm15, %v1853_v7  ;;  %v2177_v10 = vld [vmem:[%s3311_s26 + $0x14] sm:$0x1] }
 0x679   : > { %v1858_v13 = vpop.permute.xlu0 %1857  ;;  %v1779_v58 = vpop.permute.xlu1 %1778 }
 0x67a   : > { %1861 = vst.msk [vmem:[#allocation4] sm:$0xf] %vm1860_vm15, %v1858_v13  ;;  %v2178_v13 = vld [vmem:[%s3311_s26 + $0x18] sm:$0x1] }
 0x67b   : > { %1781 = vst.msk [vmem:[#allocation4 + $0xc] sm:$0xf] %vm1765_vm14, %v1779_v58  ;;  %v2179_v58 = vld [vmem:[%s3311_s26 + $0x1c] sm:$0x1] }
 0x67d   : > { %v1868_v34 = vpop.permute.xlu0 %1867  ;;  %v1864_v31 = vpop.permute.xlu1 %1863 }
 0x67e   : > { %1870 = vst.msk [vmem:[#allocation4 + $0xc] sm:$0xf] %vm1860_vm15, %v1868_v34  ;;  %1866 = vst.msk [vmem:[#allocation4 + $0x8] sm:$0xf] %vm1860_vm15, %v1864_v31 }
 0x67f   : > { %1955 = vst.msk [vmem:[#allocation4 + $0x8] sm:$0xf] %vm1949_vm0, %v1942_v49  ;;  %v2172_v49 = vld [vmem:[%s3311_s26] sm:$0x1] }
 0x681   : > { %v1952_v61 = vpop.permute.xlu0 %1951  ;;  %v1947_v9 = vpop.permute.xlu1 %1946 }
 0x682   : > { %1954 = vst.msk [vmem:[#allocation4 + $0x4] sm:$0xf] %vm1949_vm0, %v1952_v61  ;;  %1950 = vst.msk [vmem:[#allocation4] sm:$0xf] %vm1949_vm0, %v1947_v9 }
 0x685   : > { %v2036_v33 = vpop.permute.xlu0 %2035  ;;  %v1957_v43 = vpop.permute.xlu1 %1956 }
 0x686   : > { %2039 = vst.msk [vmem:[#allocation4] sm:$0xf] %vm2038_vm1, %v2036_v33 }
 0x687   : > { %1959 = vst.msk [vmem:[#allocation4 + $0xc] sm:$0xf] %vm1949_vm0, %v1957_v43 }
 0x688   : > { %2048 = vst.msk [vmem:[#allocation4 + $0xc] sm:$0xf] %vm2038_vm1, %v2031_v53  ;;  %v2175_v53 = vld [vmem:[%s3311_s26 + $0xc] sm:$0x1] }
 0x689   : > { %v2045_v37 = vpop.permute.xlu0 %2044  ;;  %v2041_v4 = vpop.permute.xlu1 %2040 }
 0x68a   : > { %2047 = vst.msk [vmem:[#allocation4 + $0x8] sm:$0xf] %vm2038_vm1, %v2045_v37  ;;  %2043 = vst.msk [vmem:[#allocation4 + $0x4] sm:$0xf] %vm2038_vm1, %v2041_v4 }
 0x691   : > { %v2861_v55 = vld [vmem:[#allocation4] sm:$0xff]   ;;  %v2862_v47 = vld [vmem:[#allocation4 + $0x8] sm:$0xff]  }
 0x692   : > { %2741 = vmatprep.mubr.msk.bf16.mxu0 %vm438_vm7, %v2861_v55 }
 0x693   : > { %2742 = vmatmul.mubr.msk.bf16.vlgmr.msra.gmra.mxu0 %vm438_vm7, %v2862_v47 }
 0x753   : > { %v2743_v50 = vpop.f32.mrf.mxu0 }
 0x754   : > { %v4062_v15 = vadd.f32 %v2743_v50, %v2586_v8 }
 0x755   : > { %v2126_v48 = vpop.f32.mrf.mxu0 }
 0x756   : > { %v4064_v54 = vadd.f32 %v2586_v8, %v2126_v48  ;;  %v2270_v18 = vmul.f32 %v2593_v36, %v4062_v15 }
 0x757   : > { %v2744_v59 = vpop.f32.mrf.mxu0 }
 0x758   : > { %v2149_v16 = vmul.f32 %v2593_v36, %v4064_v54  ;;  %v4070_v41 = vadd.f32 %v2744_v59, %v2586_v8  ;;  %v2271_v2 = vsel %vm438_vm7, %v2270_v18, 0.0  ;;  %v2288_v59 = vld [vmem:[%s3311_s26 + $0x6] sm:$0x1]  ;;  %v2289_v18 = vld [vmem:[%s3311_s26 + $0xa] sm:$0x1] }
 0x759   : > { %v2129_v40 = vpop.f32.mrf.mxu0 }
 0x75a   : > { %v4072_v17 = vadd.f32 %v2586_v8, %v2129_v40  ;;  %v2150_v63 = vsel %vm438_vm7, %v2149_v16, 0.0  ;;  %v2327_v5 = vmul.f32 %v2593_v36, %v4070_v41 }
 0x75b   : > { %2151 = vadd.xlane.f32.xlu1 %v2150_v63 }
 0x75c   : > { %v2213_v14 = vmul.f32 %v2593_v36, %v4072_v17  ;;  %v2328_v19 = vsel %vm438_vm7, %v2327_v5, 0.0  ;;  %v2292_v5 = vld [vmem:[%s3311_s26 + $0x16] sm:$0x1] }
 0x75e   : > { %v2214_v45 = vsel %vm438_vm7, %v2213_v14, 0.0  ;;  %v2290_v14 = vld [vmem:[%s3311_s26 + $0xe] sm:$0x1] }
 0x75f   : > { %2215 = vadd.xlane.f32.xlu0 %v2214_v45  ;;  %2272 = vadd.xlane.f32.xlu1 %v2271_v2  ;;  %v2291_v45 = vld [vmem:[%s3311_s26 + $0x12] sm:$0x1] }
 0x763   : > { %2329 = vadd.xlane.f32.xlu0 %v2328_v19  ;;  %v2293_v19 = vld [vmem:[%s3311_s26 + $0x1a] sm:$0x1] }
 0x7e4   : > { %v2152_v0 = vpop.xlane.xlu1 %2151 }
 0x7e5   : > { %v2159_v32 = vadd.f32 %v2594_v46, %v2152_v0 }
 0x7e7   : > { %v2595_v22 = vmul.f32 -1.442695, %v2159_v32 }
 0x7e8   : > { %v2216_v6 = vpop.xlane.xlu0 %2215  ;;  %v2273_v23 = vpop.xlane.xlu1 %2272 }
 0x7e9   : > { %2887 = vpow2.f32 %v2595_v22  ;;  %v2217_v3 = vadd.f32 %v2594_v46, %v2216_v6  ;;  %v2274_v62 = vadd.f32 %v2594_v46, %v2273_v23  ;;  %v2230_v6 = vld [vmem:[%s3311_s26 + $0x1] sm:$0x1] }
 0x7eb   : > { %v2596_v42 = vmul.f32 -1.442695, %v2217_v3  ;;  %v2597_v60 = vmul.f32 -1.442695, %v2274_v62 }
 0x7ec   : > { %v2330_v57 = vpop.xlane.xlu0 %2329 }
 0x7ed   : > { %2889 = vpow2.f32 %v2596_v42  ;;  %v2331_v12 = vadd.f32 %v2594_v46, %v2330_v57  ;;  %v2231_v42 = vld [vmem:[%s3311_s26 + $0x5] sm:$0x1] }
 0x7ee   : > { %2891 = vpow2.f32 %v2597_v60 }
 0x7ef   : > { %v2598_v35 = vmul.f32 -1.442695, %v2331_v12 }
 0x7f1   : > { %2893 = vpow2.f32 %v2598_v35 }
 0x7f6   : > { %v2888_v20 = vpop.eup %2887 }
 0x7f7   : > { %v2163_v56 = vadd.f32 1.0, %v2888_v20  ;;  %v2232_v20 = vld [vmem:[%s3311_s26 + $0x9] sm:$0x1] }
 0x7f9   : > { %2895 = vrcp.f32 %v2163_v56  ;;  %v2233_v56 = vld [vmem:[%s3311_s26 + $0xd] sm:$0x1] }
 0x7fa   : > { %v2890_v7 = vpop.eup %2889 }
 0x7fb   : > { %v2892_v26 = vpop.eup %2891  ;;  %v2221_v24 = vadd.f32 1.0, %v2890_v7  ;;  %v2234_v7 = vld [vmem:[%s3311_s26 + $0x11] sm:$0x1] }
 0x7fc   : > { %v2278_v27 = vadd.f32 1.0, %v2892_v26 }
 0x7fd   : > { %2897 = vrcp.f32 %v2221_v24 }
 0x7fe   : > { %v2894_v28 = vpop.eup %2893  ;;  %2899 = vrcp.f32 %v2278_v27 }
 0x7ff   : > { %v2335_v44 = vadd.f32 1.0, %v2894_v28  ;;  %v2235_v28 = vld [vmem:[%s3311_s26 + $0x15] sm:$0x1] }
 0x801   : > { %2901 = vrcp.f32 %v2335_v44  ;;  %v2236_v44 = vld [vmem:[%s3311_s26 + $0x19] sm:$0x1] }
 0x806   : > { %v2896_v29 = vpop.eup %2895 }
 0x807   : > { %2168 = vperm.xlu0 %2839, %v2896_v29  }
 0x80a   : > { %v2898_v25 = vpop.eup %2897 }
 0x80b   : > { %v2900_v30 = vpop.eup %2899  ;;  %2226 = vperm.xlu1 %2840, %v2898_v25   ;;  %v2237_v25 = vld [vmem:[%s3311_s26 + $0x1d] sm:$0x1] }
 0x80c   : > { %2283 = vperm.xlu0 %2839, %v2900_v30  }
 0x80e   : > { %v2902_v1 = vpop.eup %2901 }
 0x80f   : > { %2340 = vperm.xlu1 %2840, %v2902_v1  }
 0x882   : > { %v2169_v52 = vpop.permute.xlu0 %2168 }
 0x883   : > { %v2171_v39 = vmul.f32 %v2169_v52, %v4064_v54  ;;  %v2287_v54 = vld [vmem:[%s3311_s26 + $0x2] sm:$0x1] }
 0x885   : > { %v2181_v34 = vrot.slane %v2171_v39, 1  ;;  %v2182_v31 = vrot.slane %v2171_v39, 2  ;;  %v2183_v61 = vrot.slane %v2171_v39, 3  ;;  %v2184_v9 = vrot.slane %v2171_v39, 4 }
 0x886   : > { %v2185_v33 = vrot.slane %v2171_v39, 5  ;;  %v2186_v43 = vrot.slane %v2171_v39, 6  ;;  %v2187_v37 = vrot.slane %v2171_v39, 7  ;;  %v2196_v4 = vadd.f32 %v2172_v49, %v2171_v39  ;;  %v2227_v55 = vpop.permute.xlu1 %2226 }
 0x887   : > { %v2197_v47 = vadd.f32 %v2181_v34, %v2173_v51  ;;  %v2198_v50 = vadd.f32 %v2182_v31, %v2174_v38  ;;  %v2199_v8 = vadd.f32 %v2183_v61, %v2175_v53  ;;  %v2200_v48 = vadd.f32 %v2184_v9, %v2176_v11  ;;  %v2284_v36 = vpop.permute.xlu0 %2283  ;;  %v2344_v31 = vld [vmem:[%s3311_s26 + $0x3] sm:$0x1]  ;;  %v2345_v61 = vld [vmem:[%s3311_s26 + $0x7] sm:$0x1] }
 0x888   : > { %v2201_v16 = vadd.f32 %v2185_v33, %v2177_v10  ;;  %v2202_v40 = vadd.f32 %v2186_v43, %v2178_v13  ;;  %v2203_v63 = vadd.f32 %v2187_v37, %v2179_v58  ;;  %2205 = vst.msk [vmem:[%s4094_s24] sm:$0x1] %vm2204_vm2, %v2196_v4  ;;  %v2286_v2 = vmul.f32 %v2284_v36, %v4062_v15  ;;  %v2346_v43 = vld [vmem:[%s3311_s26 + $0xb] sm:$0x1]  ;;  %v2347_v37 = vld [vmem:[%s3311_s26 + $0xf] sm:$0x1] }
 0x889   : > { %2206 = vst.msk [vmem:[%s4094_s24 + $0x4] sm:$0x1] %vm2204_vm2, %v2197_v47  ;;  %2207 = vst.msk [vmem:[%s4094_s24 + $0x8] sm:$0x1] %vm2204_vm2, %v2198_v50  ;;  %v2229_v46 = vmul.f32 %v2227_v55, %v4072_v17  ;;  %v2348_v4 = vld [vmem:[%s3311_s26 + $0x13] sm:$0x1] }
 0x88a   : > { %2208 = vst.msk [vmem:[%s4094_s24 + $0xc] sm:$0x1] %vm2204_vm2, %v2199_v8  ;;  %2209 = vst.msk [vmem:[%s4094_s24 + $0x10] sm:$0x1] %vm2204_vm2, %v2200_v48  ;;  %v2296_v15 = vrot.slane %v2286_v2, 1  ;;  %v2297_v0 = vrot.slane %v2286_v2, 2  ;;  %v2311_v62 = vadd.f32 %v2287_v54, %v2286_v2  ;;  %v2341_v52 = vpop.permute.xlu1 %2340 }
 0x88b   : > { %2210 = vst.msk [vmem:[%s4094_s24 + $0x14] sm:$0x1] %vm2204_vm2, %v2201_v16  ;;  %2211 = vst.msk [vmem:[%s4094_s24 + $0x18] sm:$0x1] %vm2204_vm2, %v2202_v40  ;;  %v2298_v32 = vrot.slane %v2286_v2, 3  ;;  %v2299_v22 = vrot.slane %v2286_v2, 4  ;;  %v2254_v39 = vadd.f32 %v2230_v6, %v2229_v46  ;;  %v2343_v55 = vmul.f32 %v2341_v52, %v4070_v41 }
 0x88c   : > { %2212 = vst.msk [vmem:[%s4094_s24 + $0x1c] sm:$0x1] %vm2204_vm2, %v2203_v63  ;;  %v2300_v23 = vrot.slane %v2286_v2, 5  ;;  %v2301_v3 = vrot.slane %v2286_v2, 6  ;;  %v2302_v17 = vrot.slane %v2286_v2, 7  ;;  %v2312_v60 = vadd.f32 %v2296_v15, %v2288_v59 }
 0x88d   : > { %v2313_v57 = vadd.f32 %v2297_v0, %v2289_v18  ;;  %v2314_v12 = vadd.f32 %v2298_v32, %v2290_v14  ;;  %v2315_v35 = vadd.f32 %v2299_v22, %v2291_v45  ;;  %2319 = vst.msk [vmem:[%s4094_s24 + $0x2] sm:$0x1] %vm2204_vm2, %v2311_v62  ;;  %v2239_v29 = vrot.slane %v2229_v46, 1  ;;  %2262 = vst.msk [vmem:[%s4094_s24 + $0x1] sm:$0x1] %vm2204_vm2, %v2254_v39 }
 0x88e   : > { %v2316_v26 = vadd.f32 %v2300_v23, %v2292_v5  ;;  %v2317_v24 = vadd.f32 %v2301_v3, %v2293_v19  ;;  %v2318_v27 = vadd.f32 %v2302_v17, %v2294_v21  ;;  %2320 = vst.msk [vmem:[%s4094_s24 + $0x6] sm:$0x1] %vm2204_vm2, %v2312_v60  ;;  %v2240_v30 = vrot.slane %v2229_v46, 2  ;;  %v2349_v47 = vld [vmem:[%s3311_s26 + $0x17] sm:$0x1] }
 0x88f   : > { %2321 = vst.msk [vmem:[%s4094_s24 + $0xa] sm:$0x1] %vm2204_vm2, %v2313_v57  ;;  %2322 = vst.msk [vmem:[%s4094_s24 + $0xe] sm:$0x1] %vm2204_vm2, %v2314_v12  ;;  %v2241_v1 = vrot.slane %v2229_v46, 3  ;;  %v2242_v49 = vrot.slane %v2229_v46, 4  ;;  %v2255_v11 = vadd.f32 %v2239_v29, %v2231_v42  ;;  %v2368_v63 = vadd.f32 %v2344_v31, %v2343_v55 }
 0x890   : > { %2323 = vst.msk [vmem:[%s4094_s24 + $0x12] sm:$0x1] %vm2204_vm2, %v2315_v35  ;;  %v2243_v51 = vrot.slane %v2229_v46, 5  ;;  %2324 = vst.msk [vmem:[%s4094_s24 + $0x16] sm:$0x1] %vm2204_vm2, %v2316_v26  ;;  %v2244_v38 = vrot.slane %v2229_v46, 6  ;;  %v2256_v10 = vadd.f32 %v2240_v30, %v2232_v20 }
 0x891   : > { %2325 = vst.msk [vmem:[%s4094_s24 + $0x1a] sm:$0x1] %vm2204_vm2, %v2317_v24  ;;  %2326 = vst.msk [vmem:[%s4094_s24 + $0x1e] sm:$0x1] %vm2204_vm2, %v2318_v27  ;;  %v2245_v53 = vrot.slane %v2229_v46, 7  ;;  %v2257_v13 = vadd.f32 %v2241_v1, %v2233_v56  ;;  %v2258_v58 = vadd.f32 %v2242_v49, %v2234_v7  ;;  %v2353_v48 = vrot.slane %v2343_v55, 1 }
 0x892   : > { %v2259_v34 = vadd.f32 %v2243_v51, %v2235_v28  ;;  %v2260_v9 = vadd.f32 %v2244_v38, %v2236_v44  ;;  %2263 = vst.msk [vmem:[%s4094_s24 + $0x5] sm:$0x1] %vm2204_vm2, %v2255_v11  ;;  %2264 = vst.msk [vmem:[%s4094_s24 + $0x9] sm:$0x1] %vm2204_vm2, %v2256_v10  ;;  %v2350_v50 = vld [vmem:[%s3311_s26 + $0x1b] sm:$0x1] }
 0x893   : > { %v2261_v33 = vadd.f32 %v2245_v53, %v2237_v25  ;;  %2265 = vst.msk [vmem:[%s4094_s24 + $0xd] sm:$0x1] %vm2204_vm2, %v2257_v13  ;;  %2266 = vst.msk [vmem:[%s4094_s24 + $0x11] sm:$0x1] %vm2204_vm2, %v2258_v58  ;;  %v2351_v8 = vld [vmem:[%s3311_s26 + $0x1f] sm:$0x1]  ;;  %v2369_v18 = vadd.f32 %v2353_v48, %v2345_v61 }
 0x894   : > { %2267 = vst.msk [vmem:[%s4094_s24 + $0x15] sm:$0x1] %vm2204_vm2, %v2259_v34  ;;  %2268 = vst.msk [vmem:[%s4094_s24 + $0x19] sm:$0x1] %vm2204_vm2, %v2260_v9  ;;  %v2354_v54 = vrot.slane %v2343_v55, 2  ;;  %v2355_v41 = vrot.slane %v2343_v55, 3 }
 0x895   : > { %2269 = vst.msk [vmem:[%s4094_s24 + $0x1d] sm:$0x1] %vm2204_vm2, %v2261_v33  ;;  %v2356_v59 = vrot.slane %v2343_v55, 4  ;;  %v2357_v36 = vrot.slane %v2343_v55, 5  ;;  %v2358_v16 = vrot.slane %v2343_v55, 6  ;;  %v2359_v40 = vrot.slane %v2343_v55, 7 }
 0x896   : > { %v2370_v14 = vadd.f32 %v2354_v54, %v2346_v43  ;;  %v2371_v45 = vadd.f32 %v2355_v41, %v2347_v37  ;;  %2376 = vst.msk [vmem:[%s4094_s24 + $0x3] sm:$0x1] %vm2204_vm2, %v2368_v63  ;;  %2377 = vst.msk [vmem:[%s4094_s24 + $0x7] sm:$0x1] %vm2204_vm2, %v2369_v18 }
 0x897   : > { %v2372_v2 = vadd.f32 %v2356_v59, %v2348_v4  ;;  %v2373_v5 = vadd.f32 %v2357_v36, %v2349_v47  ;;  %v2374_v19 = vadd.f32 %v2358_v16, %v2350_v50  ;;  %v2375_v21 = vadd.f32 %v2359_v40, %v2351_v8 }
 0x898   : > { %2378 = vst.msk [vmem:[%s4094_s24 + $0xb] sm:$0x1] %vm2204_vm2, %v2370_v14  ;;  %2379 = vst.msk [vmem:[%s4094_s24 + $0xf] sm:$0x1] %vm2204_vm2, %v2371_v45 }
 0x899   : > { %2380 = vst.msk [vmem:[%s4094_s24 + $0x13] sm:$0x1] %vm2204_vm2, %v2372_v2  ;;  %2381 = vst.msk [vmem:[%s4094_s24 + $0x17] sm:$0x1] %vm2204_vm2, %v2373_v5 }
 0x89a   : > { %2382 = vst.msk [vmem:[%s4094_s24 + $0x1b] sm:$0x1] %vm2204_vm2, %v2374_v19  ;;  %2383 = vst.msk [vmem:[%s4094_s24 + $0x1f] sm:$0x1] %vm2204_vm2, %v2375_v21 }
 0x89b   : > { %3022 = shalt.err (!%p3019_p10)
}
 0x89c   : > { %s3023_s27 = scalar_lea.hbm %s4174_s15, 512  ;;  %s3027_s20 = scalar_lea.hbm %s4244_s9, 1024 }
 0x89d   : > { %p3024_p6 = scmp.ne.s32.totalorder %s4174_s15, %s3023_s27  ;;  %p3028_p3 = scmp.lt.s32.totalorder %s4174_s15, %s4244_s9 }
 0x89e   : > { %p3029_p11 = scmp.lt.s32.totalorder %s3027_s20, %s3023_s27 }
 0x89f   : > { %p3025_p4 = pnand %p3024_p6, %p4269_p1 }
 0x8a0   : > { %p3030_p5 = por %p3029_p11, %p3028_p3 }
 0x8a1   : > { %p3026_p8 = pneg %p3025_p4 }
 0x8a3   : > { %p3031_p7 = pnand %p3030_p5, %p3026_p8 }
 0x8a5   : > { %3034 = shalt.err (!%p3031_p7)
}
 0x8a6   : > { %s3103_s8 = smov 64   ;;  %s3104_s26 = smov 4  }
 0x8a7   : > { %2759 = dma.vmem_to_hbm [thread:$0]  (%p4269_p1), %s4176_s10, 512, %s4174_s15, %s2385_s28, %s3103_s8, %s3103_s8, %s3104_s26  }
 0x8a8 PF: > { %s2413_s19 = sand.u32 1, %s3069_s11   ;;  %p4270_p12 = scmp.ne.s32.totalorder %s4254_s17, 0 }
 0x8a9   : > { %p4271_p9 = scmp.ge.s32.totalorder %s3081_s14, 2  ;;  %s2414_s25 = scalar_lea.sflag [#allocation8], %s2413_s19 }
 0x8ab   : > { %p2776_p13 = pnand %p4271_p9, %p4270_p12 }
 0x8ad   : > { %p2777_p0 = pneg %p2776_p13 }
 0x8af   : > { %3064 = dma.done.wait (%p2777_p0), %s2414_s25, 512  }
 0x8b0   : > { %3066 = vsyncadd (%p2777_p0), %s2414_s25, 4294966784  ;;  %p26_p2 = scmp.ge.s32.totalorder %s3247_s23, 4   ;;  %s4272_s11 = smov %s3073_s12 }
 0x8b1   : > { %s4273_s12 = smov %s3077_s13  ;;  %s4274_s13 = smov %s3257_s29 }
 0x8b2   : > { %s4275_s14 = smov %s3247_s23  ;;  %28 = sbr.rel (!%p26_p2) target bundleno = 10 (0xa), region = 113 }
 0x8b7   :  { %2419 = vsyncpa [#allocation7], 1 }
 0x8b8   :  { %2421 = vsyncpa [#allocation7 + $0x1], 1 }
 0x8b9   :  { %2422 = vsyncpa [#allocation10], 1 }
 0x8ba   :  { %2423 = vsyncpa [#allocation13], 1 }
 0x8bb   :  { %2424 = vsyncpa [#allocation8], 1 }
 0x8bc   :  { %2426 = vsyncpa [#allocation8 + $0x1], 1 }

</bundles_post_ra>
